<compile_context>
chip_gen: v6e
topology: v6e:2x2x1
jax: 0.10.0
libtpu: 0.0.40
codegen_flags: <defaults>
</compile_context>

<pallas_src>
import functools

import jax
import jax.numpy as jnp
import numpy as np
from jax.experimental import pallas as pl
from jax.experimental.pallas import tpu as pltpu


# ----------------------------- Pallas kernel -------------------------------
def _encoder_kernel(*refs, num_layers, hidden, seq_len, batch):
    """Fused multi-layer LSTM encoder (single invocation, no grid).

    refs layout (all whole-array VMEM blocks):
      refs[0]                x2d     (B*T, E)    batch-major flattened input
      refs[1 + 3l + 0]       wih_l   (in_l, 4H)  pre-transposed W_ih
      refs[1 + 3l + 1]       whh_l   (H, 4H)     pre-transposed W_hh
      refs[1 + 3l + 2]       b_l     (1, 4H)     b_ih + b_hh
      refs[1 + 3L + 0]       out2d   (B*T, H)    final-layer sequence output
      refs[1 + 3L + 1]       hN      (L, B, H)   final hidden states
      refs[1 + 3L + 2]       cN      (L, B, H)   final cell states
    """
    H, T, B, L = hidden, seq_len, batch, num_layers
    x_ref = refs[0]
    w_refs = refs[1:1 + 3 * L]
    out_ref, hN_ref, cN_ref = refs[1 + 3 * L:4 + 3 * L]

    # Batch-major rows: row (b*T + t) holds sample b at timestep t.
    # Inter-layer activations live here as an f32 *value* (vregs), never VMEM.
    inp = x_ref[...].astype(jnp.float32)                        # (B*T, in_dim)

    for layer in range(L):
        wih = w_refs[3 * layer + 0][...].astype(jnp.float32)    # (in_dim, 4H)
        whh = w_refs[3 * layer + 1][...].astype(jnp.float32)    # (H, 4H)
        b = w_refs[3 * layer + 2][...].astype(jnp.float32)      # (1, 4H)

        # (1) Hoisted, non-recurrent input projection: one MXU matmul per
        #     layer, result kept in vregs (tiny: B*T x 4H f32 = 8 KiB).
        proj = jnp.dot(inp, wih, preferred_element_type=jnp.float32) + b
        proj = proj.reshape(B, T, 4 * H)        # layout no-op; per-t slicing

        # (2) Recurrence: fully unrolled straight-line loop; only h @ W_hh
        #     is serial per step.
        # TODO(synk): on v5e/v6e hold W_hh weight-stationary in the MXU via
        # pltpu.matmul_push_rhs (once/layer) + matmul_acc_lhs/pop per step.
        # TODO(synk): switch to lax.fori_loop(..., unroll=4) carrying (h, c)
        # if T ever grows beyond ~64.
        h = jnp.zeros((B, H), jnp.float32)
        c = jnp.zeros((B, H), jnp.float32)
        hs = []
        for t in range(T):
            g = proj[:, t, :] + jnp.dot(h, whh,
                                        preferred_element_type=jnp.float32)
            # Full 4H(=128 lane) width activations -> EUP; narrow lane slices
            # only for the combine (H=32 lanes).
            sig = jax.nn.sigmoid(g)
            th = jnp.tanh(g)
            i_g = sig[:, 0 * H:1 * H]
            f_g = sig[:, 1 * H:2 * H]
            g_g = th[:, 2 * H:3 * H]
            o_g = sig[:, 3 * H:4 * H]
            c = f_g * c + i_g * g_g
            h = o_g * jnp.tanh(c)
            hs.append(h)

        # (B, T, H) -> (B*T, H), batch-major; stays in vregs (f32) as the
        # next layer's input — no VMEM round trip, no requantization.
        inp = jnp.stack(hs, axis=1).reshape(B * T, H)

        hN_ref[layer, :, :] = h.astype(hN_ref.dtype)
        cN_ref[layer, :, :] = c.astype(cN_ref.dtype)

    # Single coalesced store of the final layer's full sequence output.
    out_ref[...] = inp.astype(out_ref.dtype)


# ----------------------------- forward wrapper ------------------------------
@functools.partial(jax.jit, static_argnames=("hidden_size", "num_layers"))
def _encoder_forward(x, flat_params, *, hidden_size, num_layers):
    """x: (B, T, E).  flat_params: per layer [wih^T, whh^T, b_ih+b_hh]."""
    B, T, E = x.shape
    H = hidden_size
    dtype = x.dtype

    # Zero-copy flatten (batch-major rows b*T + t) — no XLA transpose op.
    x2d = x.reshape(B * T, E)

    kernel = functools.partial(_encoder_kernel, num_layers=num_layers,
                               hidden=H, seq_len=T, batch=B)
    n_in = 1 + 3 * num_layers
    # TODO(synk): when T*B grows, tile the hoisted projection over T (grid
    # axis / emit_pipeline) and add a "parallel" batch grid axis so v7x's
    # second TensorCore is used; all-resident design is fine at these sizes.
    out2d, h_n, c_n = pl.pallas_call(
        kernel,
        out_shape=(
            jax.ShapeDtypeStruct((B * T, H), dtype),
            jax.ShapeDtypeStruct((num_layers, B, H), dtype),
            jax.ShapeDtypeStruct((num_layers, B, H), dtype),
        ),
        in_specs=[pl.BlockSpec(memory_space=pltpu.MemorySpace.VMEM)] * n_in,
        out_specs=(
            pl.BlockSpec(memory_space=pltpu.MemorySpace.VMEM),
            pl.BlockSpec(memory_space=pltpu.MemorySpace.VMEM),
            pl.BlockSpec(memory_space=pltpu.MemorySpace.VMEM),
        ),
        compiler_params=pltpu.CompilerParams(
            vmem_limit_bytes=32 * 1024 * 1024),
    )(x2d, *flat_params)

    output = out2d.reshape(B, T, H)     # zero-copy — no XLA transpose op
    return output, (h_n, c_n)


# ----------------------------- Encoder class --------------------------------
class Encoder:
    """JAX/Pallas port of the PyTorch Encoder (nn.LSTM, batch_first=True)."""

    def __init__(self, embedding_size, hidden_size, num_layers, key):
        self.embedding_size = embedding_size
        self.hidden_size = hidden_size
        self.num_layers = num_layers

        k = 1.0 / np.sqrt(hidden_size)
        self.params = []           # raw PyTorch-layout params (reference check)
        kernel_params = []         # pre-transposed / pre-summed (hoisted prep)
        for layer in range(num_layers):
            in_dim = embedding_size if layer == 0 else hidden_size
            key, k1, k2, k3, k4 = jax.random.split(key, 5)
            w_ih = jax.random.uniform(k1, (4 * hidden_size, in_dim),
                                      jnp.float32, -k, k)
            w_hh = jax.random.uniform(k2, (4 * hidden_size, hidden_size),
                                      jnp.float32, -k, k)
            b_ih = jax.random.uniform(k3, (4 * hidden_size,), jnp.float32, -k, k)
            b_hh = jax.random.uniform(k4, (4 * hidden_size,), jnp.float32, -k, k)
            self.params.append((w_ih, w_hh, b_ih, b_hh))
            kernel_params.extend([
                jnp.asarray(w_ih).T,                               # (in_dim, 4H)
                jnp.asarray(w_hh).T,                               # (H, 4H)
                (b_ih + b_hh).reshape(1, 4 * hidden_size),         # (1, 4H)
            ])
        self.kernel_params = tuple(kernel_params)

    def __call__(self, embedded_seqs):
        """embedded_seqs: (B, T, E). Returns (output, (h_n, c_n)) like PyTorch."""
        return _encoder_forward(embedded_seqs, self.kernel_params,
                                hidden_size=self.hidden_size,
                                num_layers=self.num_layers)


# ----------------------------- pure-JAX reference ---------------------------
def _reference_encoder(params, embedded_seqs, hidden_size):
    x = jnp.transpose(embedded_seqs, (1, 0, 2)).astype(jnp.float32)
    H = hidden_size
    h_fin, c_fin = [], []
    for (w_ih, w_hh, b_ih, b_hh) in params:
        def step(carry, x_t):
            h, c = carry
            g = x_t @ w_ih.T + h @ w_hh.T + b_ih + b_hh
            i = jax.nn.sigmoid(g[:, 0 * H:1 * H])
            f = jax.nn.sigmoid(g[:, 1 * H:2 * H])
            gg = jnp.tanh(g[:, 2 * H:3 * H])
            o = jax.nn.sigmoid(g[:, 3 * H:4 * H])
            c_new = f * c + i * gg
            h_new = o * jnp.tanh(c_new)
            return (h_new, c_new), h_new

        B = x.shape[1]
        init = (jnp.zeros((B, H), jnp.float32), jnp.zeros((B, H), jnp.float32))
        (h_n, c_n), x = jax.lax.scan(step, init, x)
        h_fin.append(h_n)
        c_fin.append(c_n)
    return (jnp.transpose(x, (1, 0, 2)),
            (jnp.stack(h_fin, 0), jnp.stack(c_fin, 0)))


# ---------------------------------- main ------------------------------------
if __name__ == "__main__":
    batch, seq_len = 2, 8
    embedding_size, hidden_size, num_layers = 16, 32, 2

    key = jax.random.PRNGKey(0)
    key_params, key_x = jax.random.split(key)

    encoder = Encoder(embedding_size, hidden_size, num_layers, key_params)
    x = jax.random.normal(key_x, (batch, seq_len, embedding_size), jnp.float32)

    output, (h_n, c_n) = encoder(x)
    output = jax.block_until_ready(output)
    h_n = jax.block_until_ready(h_n)
    c_n = jax.block_until_ready(c_n)

    assert output.shape == (batch, seq_len, hidden_size)
    assert h_n.shape == (num_layers, batch, hidden_size)
    assert c_n.shape == (num_layers, batch, hidden_size)

    ref_out, (ref_h, ref_c) = _reference_encoder(encoder.params, x, hidden_size)
    np.testing.assert_allclose(np.asarray(output), np.asarray(ref_out),
                               rtol=1e-5, atol=1e-5)
    np.testing.assert_allclose(np.asarray(h_n), np.asarray(ref_h),
                               rtol=1e-5, atol=1e-5)
    np.testing.assert_allclose(np.asarray(c_n), np.asarray(ref_c),
                               rtol=1e-5, atol=1e-5)

    print("KERNEL_OK")
</pallas_src>

<mosaic_0001>
module attributes {stable_mosaic.version = 11 : i64} {
  func.func @_encoder_kernel(%arg0: memref<16x16xf32, #tpu.memory_space<vmem>>, %arg1: memref<16x128xf32, #tpu.memory_space<vmem>>, %arg2: memref<32x128xf32, #tpu.memory_space<vmem>>, %arg3: memref<1x128xf32, #tpu.memory_space<vmem>>, %arg4: memref<32x128xf32, #tpu.memory_space<vmem>>, %arg5: memref<32x128xf32, #tpu.memory_space<vmem>>, %arg6: memref<1x128xf32, #tpu.memory_space<vmem>>, %arg7: memref<16x32xf32, #tpu.memory_space<vmem>>, %arg8: memref<2x2x32xf32, #tpu.memory_space<vmem>>, %arg9: memref<2x2x32xf32, #tpu.memory_space<vmem>>) attributes {dimension_semantics = [], scalar_prefetch = 0 : i64, scratch_operands = 0 : i64, tpu.core_type = #tpu.core_type<tc>} {
    %c0 = arith.constant 0 : index
    %c0_0 = arith.constant 0 : index
    %0 = vector.load %arg0[%c0, %c0_0] : memref<16x16xf32, #tpu.memory_space<vmem>>, vector<16x16xf32>
    %c0_1 = arith.constant 0 : index
    %c0_2 = arith.constant 0 : index
    %1 = vector.load %arg1[%c0_1, %c0_2] : memref<16x128xf32, #tpu.memory_space<vmem>>, vector<16x128xf32>
    %c0_3 = arith.constant 0 : index
    %c0_4 = arith.constant 0 : index
    %2 = vector.load %arg2[%c0_3, %c0_4] : memref<32x128xf32, #tpu.memory_space<vmem>>, vector<32x128xf32>
    %c0_5 = arith.constant 0 : index
    %c0_6 = arith.constant 0 : index
    %3 = vector.load %arg3[%c0_5, %c0_6] : memref<1x128xf32, #tpu.memory_space<vmem>>, vector<1x128xf32>
    %cst = arith.constant dense<0.000000e+00> : vector<16x128xf32>
    %4 = tpu.matmul %0, %1, %cst {dimension_numbers = #tpu.dot_dimension_numbers<[1], [0], [0], [1], [0, 0, 1, 1], [], []>} : vector<16x16xf32>, vector<16x128xf32>, vector<16x128xf32> -> vector<16x128xf32>
    %5 = vector.broadcast %3 : vector<1x128xf32> to vector<16x128xf32>
    %6 = arith.addf %4, %5 : vector<16x128xf32>
    %7 = vector.shape_cast %6 : vector<16x128xf32> to vector<2x8x128xf32>
    %cst_7 = arith.constant 0.000000e+00 : f32
    %8 = vector.broadcast %cst_7 : f32 to vector<2x32xf32>
    %cst_8 = arith.constant 0.000000e+00 : f32
    %9 = vector.broadcast %cst_8 : f32 to vector<2x32xf32>
    %10 = vector.extract_strided_slice %7 {offsets = [0, 0, 0], sizes = [2, 1, 128], strides = [1, 1, 1]} : vector<2x8x128xf32> to vector<2x1x128xf32>
    %11 = vector.shape_cast %10 : vector<2x1x128xf32> to vector<2x128xf32>
    %cst_9 = arith.constant dense<0.000000e+00> : vector<2x128xf32>
    %12 = tpu.matmul %8, %2, %cst_9 {dimension_numbers = #tpu.dot_dimension_numbers<[1], [0], [0], [1], [0, 0, 1, 1], [], []>} : vector<2x32xf32>, vector<32x128xf32>, vector<2x128xf32> -> vector<2x128xf32>
    %13 = arith.addf %11, %12 : vector<2x128xf32>
    %14 = arith.negf %13 : vector<2x128xf32>
    %15 = math.exp %14 : vector<2x128xf32>
    %cst_10 = arith.constant 1.000000e+00 : f32
    %16 = vector.broadcast %cst_10 : f32 to vector<2x128xf32>
    %17 = arith.addf %16, %15 : vector<2x128xf32>
    %18 = arith.divf %16, %17 : vector<2x128xf32>
    %19 = math.tanh %13 : vector<2x128xf32>
    %20 = vector.extract_strided_slice %18 {offsets = [0, 0], sizes = [2, 32], strides = [1, 1]} : vector<2x128xf32> to vector<2x32xf32>
    %21 = vector.extract_strided_slice %18 {offsets = [0, 32], sizes = [2, 32], strides = [1, 1]} : vector<2x128xf32> to vector<2x32xf32>
    %22 = vector.extract_strided_slice %19 {offsets = [0, 64], sizes = [2, 32], strides = [1, 1]} : vector<2x128xf32> to vector<2x32xf32>
    %23 = vector.extract_strided_slice %18 {offsets = [0, 96], sizes = [2, 32], strides = [1, 1]} : vector<2x128xf32> to vector<2x32xf32>
    %24 = arith.mulf %21, %9 : vector<2x32xf32>
    %25 = arith.mulf %20, %22 : vector<2x32xf32>
    %26 = arith.addf %24, %25 : vector<2x32xf32>
    %27 = math.tanh %26 : vector<2x32xf32>
    %28 = arith.mulf %23, %27 : vector<2x32xf32>
    %29 = vector.extract_strided_slice %7 {offsets = [0, 1, 0], sizes = [2, 1, 128], strides = [1, 1, 1]} : vector<2x8x128xf32> to vector<2x1x128xf32>
    %30 = vector.shape_cast %29 : vector<2x1x128xf32> to vector<2x128xf32>
    %cst_11 = arith.constant dense<0.000000e+00> : vector<2x128xf32>
    %31 = tpu.matmul %28, %2, %cst_11 {dimension_numbers = #tpu.dot_dimension_numbers<[1], [0], [0], [1], [0, 0, 1, 1], [], []>} : vector<2x32xf32>, vector<32x128xf32>, vector<2x128xf32> -> vector<2x128xf32>
    %32 = arith.addf %30, %31 : vector<2x128xf32>
    %33 = arith.negf %32 : vector<2x128xf32>
    %34 = math.exp %33 : vector<2x128xf32>
    %cst_12 = arith.constant 1.000000e+00 : f32
    %35 = vector.broadcast %cst_12 : f32 to vector<2x128xf32>
    %36 = arith.addf %35, %34 : vector<2x128xf32>
    %37 = arith.divf %35, %36 : vector<2x128xf32>
    %38 = math.tanh %32 : vector<2x128xf32>
    %39 = vector.extract_strided_slice %37 {offsets = [0, 0], sizes = [2, 32], strides = [1, 1]} : vector<2x128xf32> to vector<2x32xf32>
    %40 = vector.extract_strided_slice %37 {offsets = [0, 32], sizes = [2, 32], strides = [1, 1]} : vector<2x128xf32> to vector<2x32xf32>
    %41 = vector.extract_strided_slice %38 {offsets = [0, 64], sizes = [2, 32], strides = [1, 1]} : vector<2x128xf32> to vector<2x32xf32>
    %42 = vector.extract_strided_slice %37 {offsets = [0, 96], sizes = [2, 32], strides = [1, 1]} : vector<2x128xf32> to vector<2x32xf32>
    %43 = arith.mulf %40, %26 : vector<2x32xf32>
    %44 = arith.mulf %39, %41 : vector<2x32xf32>
    %45 = arith.addf %43, %44 : vector<2x32xf32>
    %46 = math.tanh %45 : vector<2x32xf32>
    %47 = arith.mulf %42, %46 : vector<2x32xf32>
    %48 = vector.extract_strided_slice %7 {offsets = [0, 2, 0], sizes = [2, 1, 128], strides = [1, 1, 1]} : vector<2x8x128xf32> to vector<2x1x128xf32>
    %49 = vector.shape_cast %48 : vector<2x1x128xf32> to vector<2x128xf32>
    %cst_13 = arith.constant dense<0.000000e+00> : vector<2x128xf32>
    %50 = tpu.matmul %47, %2, %cst_13 {dimension_numbers = #tpu.dot_dimension_numbers<[1], [0], [0], [1], [0, 0, 1, 1], [], []>} : vector<2x32xf32>, vector<32x128xf32>, vector<2x128xf32> -> vector<2x128xf32>
    %51 = arith.addf %49, %50 : vector<2x128xf32>
    %52 = arith.negf %51 : vector<2x128xf32>
    %53 = math.exp %52 : vector<2x128xf32>
    %cst_14 = arith.constant 1.000000e+00 : f32
    %54 = vector.broadcast %cst_14 : f32 to vector<2x128xf32>
    %55 = arith.addf %54, %53 : vector<2x128xf32>
    %56 = arith.divf %54, %55 : vector<2x128xf32>
    %57 = math.tanh %51 : vector<2x128xf32>
    %58 = vector.extract_strided_slice %56 {offsets = [0, 0], sizes = [2, 32], strides = [1, 1]} : vector<2x128xf32> to vector<2x32xf32>
    %59 = vector.extract_strided_slice %56 {offsets = [0, 32], sizes = [2, 32], strides = [1, 1]} : vector<2x128xf32> to vector<2x32xf32>
    %60 = vector.extract_strided_slice %57 {offsets = [0, 64], sizes = [2, 32], strides = [1, 1]} : vector<2x128xf32> to vector<2x32xf32>
    %61 = vector.extract_strided_slice %56 {offsets = [0, 96], sizes = [2, 32], strides = [1, 1]} : vector<2x128xf32> to vector<2x32xf32>
    %62 = arith.mulf %59, %45 : vector<2x32xf32>
    %63 = arith.mulf %58, %60 : vector<2x32xf32>
    %64 = arith.addf %62, %63 : vector<2x32xf32>
    %65 = math.tanh %64 : vector<2x32xf32>
    %66 = arith.mulf %61, %65 : vector<2x32xf32>
    %67 = vector.extract_strided_slice %7 {offsets = [0, 3, 0], sizes = [2, 1, 128], strides = [1, 1, 1]} : vector<2x8x128xf32> to vector<2x1x128xf32>
    %68 = vector.shape_cast %67 : vector<2x1x128xf32> to vector<2x128xf32>
    %cst_15 = arith.constant dense<0.000000e+00> : vector<2x128xf32>
    %69 = tpu.matmul %66, %2, %cst_15 {dimension_numbers = #tpu.dot_dimension_numbers<[1], [0], [0], [1], [0, 0, 1, 1], [], []>} : vector<2x32xf32>, vector<32x128xf32>, vector<2x128xf32> -> vector<2x128xf32>
    %70 = arith.addf %68, %69 : vector<2x128xf32>
    %71 = arith.negf %70 : vector<2x128xf32>
    %72 = math.exp %71 : vector<2x128xf32>
    %cst_16 = arith.constant 1.000000e+00 : f32
    %73 = vector.broadcast %cst_16 : f32 to vector<2x128xf32>
    %74 = arith.addf %73, %72 : vector<2x128xf32>
    %75 = arith.divf %73, %74 : vector<2x128xf32>
    %76 = math.tanh %70 : vector<2x128xf32>
    %77 = vector.extract_strided_slice %75 {offsets = [0, 0], sizes = [2, 32], strides = [1, 1]} : vector<2x128xf32> to vector<2x32xf32>
    %78 = vector.extract_strided_slice %75 {offsets = [0, 32], sizes = [2, 32], strides = [1, 1]} : vector<2x128xf32> to vector<2x32xf32>
    %79 = vector.extract_strided_slice %76 {offsets = [0, 64], sizes = [2, 32], strides = [1, 1]} : vector<2x128xf32> to vector<2x32xf32>
    %80 = vector.extract_strided_slice %75 {offsets = [0, 96], sizes = [2, 32], strides = [1, 1]} : vector<2x128xf32> to vector<2x32xf32>
    %81 = arith.mulf %78, %64 : vector<2x32xf32>
    %82 = arith.mulf %77, %79 : vector<2x32xf32>
    %83 = arith.addf %81, %82 : vector<2x32xf32>
    %84 = math.tanh %83 : vector<2x32xf32>
    %85 = arith.mulf %80, %84 : vector<2x32xf32>
    %86 = vector.extract_strided_slice %7 {offsets = [0, 4, 0], sizes = [2, 1, 128], strides = [1, 1, 1]} : vector<2x8x128xf32> to vector<2x1x128xf32>
    %87 = vector.shape_cast %86 : vector<2x1x128xf32> to vector<2x128xf32>
    %cst_17 = arith.constant dense<0.000000e+00> : vector<2x128xf32>
    %88 = tpu.matmul %85, %2, %cst_17 {dimension_numbers = #tpu.dot_dimension_numbers<[1], [0], [0], [1], [0, 0, 1, 1], [], []>} : vector<2x32xf32>, vector<32x128xf32>, vector<2x128xf32> -> vector<2x128xf32>
    %89 = arith.addf %87, %88 : vector<2x128xf32>
    %90 = arith.negf %89 : vector<2x128xf32>
    %91 = math.exp %90 : vector<2x128xf32>
    %cst_18 = arith.constant 1.000000e+00 : f32
    %92 = vector.broadcast %cst_18 : f32 to vector<2x128xf32>
    %93 = arith.addf %92, %91 : vector<2x128xf32>
    %94 = arith.divf %92, %93 : vector<2x128xf32>
    %95 = math.tanh %89 : vector<2x128xf32>
    %96 = vector.extract_strided_slice %94 {offsets = [0, 0], sizes = [2, 32], strides = [1, 1]} : vector<2x128xf32> to vector<2x32xf32>
    %97 = vector.extract_strided_slice %94 {offsets = [0, 32], sizes = [2, 32], strides = [1, 1]} : vector<2x128xf32> to vector<2x32xf32>
    %98 = vector.extract_strided_slice %95 {offsets = [0, 64], sizes = [2, 32], strides = [1, 1]} : vector<2x128xf32> to vector<2x32xf32>
    %99 = vector.extract_strided_slice %94 {offsets = [0, 96], sizes = [2, 32], strides = [1, 1]} : vector<2x128xf32> to vector<2x32xf32>
    %100 = arith.mulf %97, %83 : vector<2x32xf32>
    %101 = arith.mulf %96, %98 : vector<2x32xf32>
    %102 = arith.addf %100, %101 : vector<2x32xf32>
    %103 = math.tanh %102 : vector<2x32xf32>
    %104 = arith.mulf %99, %103 : vector<2x32xf32>
    %105 = vector.extract_strided_slice %7 {offsets = [0, 5, 0], sizes = [2, 1, 128], strides = [1, 1, 1]} : vector<2x8x128xf32> to vector<2x1x128xf32>
    %106 = vector.shape_cast %105 : vector<2x1x128xf32> to vector<2x128xf32>
    %cst_19 = arith.constant dense<0.000000e+00> : vector<2x128xf32>
    %107 = tpu.matmul %104, %2, %cst_19 {dimension_numbers = #tpu.dot_dimension_numbers<[1], [0], [0], [1], [0, 0, 1, 1], [], []>} : vector<2x32xf32>, vector<32x128xf32>, vector<2x128xf32> -> vector<2x128xf32>
    %108 = arith.addf %106, %107 : vector<2x128xf32>
    %109 = arith.negf %108 : vector<2x128xf32>
    %110 = math.exp %109 : vector<2x128xf32>
    %cst_20 = arith.constant 1.000000e+00 : f32
    %111 = vector.broadcast %cst_20 : f32 to vector<2x128xf32>
    %112 = arith.addf %111, %110 : vector<2x128xf32>
    %113 = arith.divf %111, %112 : vector<2x128xf32>
    %114 = math.tanh %108 : vector<2x128xf32>
    %115 = vector.extract_strided_slice %113 {offsets = [0, 0], sizes = [2, 32], strides = [1, 1]} : vector<2x128xf32> to vector<2x32xf32>
    %116 = vector.extract_strided_slice %113 {offsets = [0, 32], sizes = [2, 32], strides = [1, 1]} : vector<2x128xf32> to vector<2x32xf32>
    %117 = vector.extract_strided_slice %114 {offsets = [0, 64], sizes = [2, 32], strides = [1, 1]} : vector<2x128xf32> to vector<2x32xf32>
    %118 = vector.extract_strided_slice %113 {offsets = [0, 96], sizes = [2, 32], strides = [1, 1]} : vector<2x128xf32> to vector<2x32xf32>
    %119 = arith.mulf %116, %102 : vector<2x32xf32>
    %120 = arith.mulf %115, %117 : vector<2x32xf32>
    %121 = arith.addf %119, %120 : vector<2x32xf32>
    %122 = math.tanh %121 : vector<2x32xf32>
    %123 = arith.mulf %118, %122 : vector<2x32xf32>
    %124 = vector.extract_strided_slice %7 {offsets = [0, 6, 0], sizes = [2, 1, 128], strides = [1, 1, 1]} : vector<2x8x128xf32> to vector<2x1x128xf32>
    %125 = vector.shape_cast %124 : vector<2x1x128xf32> to vector<2x128xf32>
    %cst_21 = arith.constant dense<0.000000e+00> : vector<2x128xf32>
    %126 = tpu.matmul %123, %2, %cst_21 {dimension_numbers = #tpu.dot_dimension_numbers<[1], [0], [0], [1], [0, 0, 1, 1], [], []>} : vector<2x32xf32>, vector<32x128xf32>, vector<2x128xf32> -> vector<2x128xf32>
    %127 = arith.addf %125, %126 : vector<2x128xf32>
    %128 = arith.negf %127 : vector<2x128xf32>
    %129 = math.exp %128 : vector<2x128xf32>
    %cst_22 = arith.constant 1.000000e+00 : f32
    %130 = vector.broadcast %cst_22 : f32 to vector<2x128xf32>
    %131 = arith.addf %130, %129 : vector<2x128xf32>
    %132 = arith.divf %130, %131 : vector<2x128xf32>
    %133 = math.tanh %127 : vector<2x128xf32>
    %134 = vector.extract_strided_slice %132 {offsets = [0, 0], sizes = [2, 32], strides = [1, 1]} : vector<2x128xf32> to vector<2x32xf32>
    %135 = vector.extract_strided_slice %132 {offsets = [0, 32], sizes = [2, 32], strides = [1, 1]} : vector<2x128xf32> to vector<2x32xf32>
    %136 = vector.extract_strided_slice %133 {offsets = [0, 64], sizes = [2, 32], strides = [1, 1]} : vector<2x128xf32> to vector<2x32xf32>
    %137 = vector.extract_strided_slice %132 {offsets = [0, 96], sizes = [2, 32], strides = [1, 1]} : vector<2x128xf32> to vector<2x32xf32>
    %138 = arith.mulf %135, %121 : vector<2x32xf32>
    %139 = arith.mulf %134, %136 : vector<2x32xf32>
    %140 = arith.addf %138, %139 : vector<2x32xf32>
    %141 = math.tanh %140 : vector<2x32xf32>
    %142 = arith.mulf %137, %141 : vector<2x32xf32>
    %143 = vector.extract_strided_slice %7 {offsets = [0, 7, 0], sizes = [2, 1, 128], strides = [1, 1, 1]} : vector<2x8x128xf32> to vector<2x1x128xf32>
    %144 = vector.shape_cast %143 : vector<2x1x128xf32> to vector<2x128xf32>
    %cst_23 = arith.constant dense<0.000000e+00> : vector<2x128xf32>
    %145 = tpu.matmul %142, %2, %cst_23 {dimension_numbers = #tpu.dot_dimension_numbers<[1], [0], [0], [1], [0, 0, 1, 1], [], []>} : vector<2x32xf32>, vector<32x128xf32>, vector<2x128xf32> -> vector<2x128xf32>
    %146 = arith.addf %144, %145 : vector<2x128xf32>
    %147 = arith.negf %146 : vector<2x128xf32>
    %148 = math.exp %147 : vector<2x128xf32>
    %cst_24 = arith.constant 1.000000e+00 : f32
    %149 = vector.broadcast %cst_24 : f32 to vector<2x128xf32>
    %150 = arith.addf %149, %148 : vector<2x128xf32>
    %151 = arith.divf %149, %150 : vector<2x128xf32>
    %152 = math.tanh %146 : vector<2x128xf32>
    %153 = vector.extract_strided_slice %151 {offsets = [0, 0], sizes = [2, 32], strides = [1, 1]} : vector<2x128xf32> to vector<2x32xf32>
    %154 = vector.extract_strided_slice %151 {offsets = [0, 32], sizes = [2, 32], strides = [1, 1]} : vector<2x128xf32> to vector<2x32xf32>
    %155 = vector.extract_strided_slice %152 {offsets = [0, 64], sizes = [2, 32], strides = [1, 1]} : vector<2x128xf32> to vector<2x32xf32>
    %156 = vector.extract_strided_slice %151 {offsets = [0, 96], sizes = [2, 32], strides = [1, 1]} : vector<2x128xf32> to vector<2x32xf32>
    %157 = arith.mulf %154, %140 : vector<2x32xf32>
    %158 = arith.mulf %153, %155 : vector<2x32xf32>
    %159 = arith.addf %157, %158 : vector<2x32xf32>
    %160 = math.tanh %159 : vector<2x32xf32>
    %161 = arith.mulf %156, %160 : vector<2x32xf32>
    %162 = vector.shape_cast %28 : vector<2x32xf32> to vector<2x1x32xf32>
    %163 = vector.shape_cast %47 : vector<2x32xf32> to vector<2x1x32xf32>
    %164 = vector.shape_cast %66 : vector<2x32xf32> to vector<2x1x32xf32>
    %165 = vector.shape_cast %85 : vector<2x32xf32> to vector<2x1x32xf32>
    %166 = vector.shape_cast %104 : vector<2x32xf32> to vector<2x1x32xf32>
    %167 = vector.shape_cast %123 : vector<2x32xf32> to vector<2x1x32xf32>
    %168 = vector.shape_cast %142 : vector<2x32xf32> to vector<2x1x32xf32>
    %169 = vector.shape_cast %161 : vector<2x32xf32> to vector<2x1x32xf32>
    %170 = tpu.concatenate %162, %163, %164, %165, %166, %167, %168, %169 in 1 : vector<2x1x32xf32>, vector<2x1x32xf32>, vector<2x1x32xf32>, vector<2x1x32xf32>, vector<2x1x32xf32>, vector<2x1x32xf32>, vector<2x1x32xf32>, vector<2x1x32xf32> -> vector<2x8x32xf32>
    %171 = vector.shape_cast %170 : vector<2x8x32xf32> to vector<16x32xf32>
    %c0_25 = arith.constant 0 : index
    %c0_26 = arith.constant 0 : index
    %c0_27 = arith.constant 0 : index
    %172 = vector.load %arg8[%c0_25, %c0_26, %c0_27] : memref<2x2x32xf32, #tpu.memory_space<vmem>>, vector<1x2x32xf32>
    %173 = vector.shape_cast %172 : vector<1x2x32xf32> to vector<2x32xf32>
    %174 = vector.shape_cast %161 : vector<2x32xf32> to vector<1x2x32xf32>
    tpu.vector_store %arg8[%c0_25, %c0_26, %c0_27], %174 {strides = array<i32>} : memref<2x2x32xf32, #tpu.memory_space<vmem>>, vector<1x2x32xf32>,
    %c0_28 = arith.constant 0 : index
    %c0_29 = arith.constant 0 : index
    %c0_30 = arith.constant 0 : index
    %175 = vector.load %arg9[%c0_28, %c0_29, %c0_30] : memref<2x2x32xf32, #tpu.memory_space<vmem>>, vector<1x2x32xf32>
    %176 = vector.shape_cast %175 : vector<1x2x32xf32> to vector<2x32xf32>
    %177 = vector.shape_cast %159 : vector<2x32xf32> to vector<1x2x32xf32>
    tpu.vector_store %arg9[%c0_28, %c0_29, %c0_30], %177 {strides = array<i32>} : memref<2x2x32xf32, #tpu.memory_space<vmem>>, vector<1x2x32xf32>,
    %c0_31 = arith.constant 0 : index
    %c0_32 = arith.constant 0 : index
    %178 = vector.load %arg4[%c0_31, %c0_32] : memref<32x128xf32, #tpu.memory_space<vmem>>, vector<32x128xf32>
    %c0_33 = arith.constant 0 : index
    %c0_34 = arith.constant 0 : index
    %179 = vector.load %arg5[%c0_33, %c0_34] : memref<32x128xf32, #tpu.memory_space<vmem>>, vector<32x128xf32>
    %c0_35 = arith.constant 0 : index
    %c0_36 = arith.constant 0 : index
    %180 = vector.load %arg6[%c0_35, %c0_36] : memref<1x128xf32, #tpu.memory_space<vmem>>, vector<1x128xf32>
    %cst_37 = arith.constant dense<0.000000e+00> : vector<16x128xf32>
    %181 = tpu.matmul %171, %178, %cst_37 {dimension_numbers = #tpu.dot_dimension_numbers<[1], [0], [0], [1], [0, 0, 1, 1], [], []>} : vector<16x32xf32>, vector<32x128xf32>, vector<16x128xf32> -> vector<16x128xf32>
    %182 = vector.broadcast %180 : vector<1x128xf32> to vector<16x128xf32>
    %183 = arith.addf %181, %182 : vector<16x128xf32>
    %184 = vector.shape_cast %183 : vector<16x128xf32> to vector<2x8x128xf32>
    %cst_38 = arith.constant 0.000000e+00 : f32
    %185 = vector.broadcast %cst_38 : f32 to vector<2x32xf32>
    %cst_39 = arith.constant 0.000000e+00 : f32
    %186 = vector.broadcast %cst_39 : f32 to vector<2x32xf32>
    %187 = vector.extract_strided_slice %184 {offsets = [0, 0, 0], sizes = [2, 1, 128], strides = [1, 1, 1]} : vector<2x8x128xf32> to vector<2x1x128xf32>
    %188 = vector.shape_cast %187 : vector<2x1x128xf32> to vector<2x128xf32>
    %cst_40 = arith.constant dense<0.000000e+00> : vector<2x128xf32>
    %189 = tpu.matmul %185, %179, %cst_40 {dimension_numbers = #tpu.dot_dimension_numbers<[1], [0], [0], [1], [0, 0, 1, 1], [], []>} : vector<2x32xf32>, vector<32x128xf32>, vector<2x128xf32> -> vector<2x128xf32>
    %190 = arith.addf %188, %189 : vector<2x128xf32>
    %191 = arith.negf %190 : vector<2x128xf32>
    %192 = math.exp %191 : vector<2x128xf32>
    %cst_41 = arith.constant 1.000000e+00 : f32
    %193 = vector.broadcast %cst_41 : f32 to vector<2x128xf32>
    %194 = arith.addf %193, %192 : vector<2x128xf32>
    %195 = arith.divf %193, %194 : vector<2x128xf32>
    %196 = math.tanh %190 : vector<2x128xf32>
    %197 = vector.extract_strided_slice %195 {offsets = [0, 0], sizes = [2, 32], strides = [1, 1]} : vector<2x128xf32> to vector<2x32xf32>
    %198 = vector.extract_strided_slice %195 {offsets = [0, 32], sizes = [2, 32], strides = [1, 1]} : vector<2x128xf32> to vector<2x32xf32>
    %199 = vector.extract_strided_slice %196 {offsets = [0, 64], sizes = [2, 32], strides = [1, 1]} : vector<2x128xf32> to vector<2x32xf32>
    %200 = vector.extract_strided_slice %195 {offsets = [0, 96], sizes = [2, 32], strides = [1, 1]} : vector<2x128xf32> to vector<2x32xf32>
    %201 = arith.mulf %198, %186 : vector<2x32xf32>
    %202 = arith.mulf %197, %199 : vector<2x32xf32>
    %203 = arith.addf %201, %202 : vector<2x32xf32>
    %204 = math.tanh %203 : vector<2x32xf32>
    %205 = arith.mulf %200, %204 : vector<2x32xf32>
    %206 = vector.extract_strided_slice %184 {offsets = [0, 1, 0], sizes = [2, 1, 128], strides = [1, 1, 1]} : vector<2x8x128xf32> to vector<2x1x128xf32>
    %207 = vector.shape_cast %206 : vector<2x1x128xf32> to vector<2x128xf32>
    %cst_42 = arith.constant dense<0.000000e+00> : vector<2x128xf32>
    %208 = tpu.matmul %205, %179, %cst_42 {dimension_numbers = #tpu.dot_dimension_numbers<[1], [0], [0], [1], [0, 0, 1, 1], [], []>} : vector<2x32xf32>, vector<32x128xf32>, vector<2x128xf32> -> vector<2x128xf32>
    %209 = arith.addf %207, %208 : vector<2x128xf32>
    %210 = arith.negf %209 : vector<2x128xf32>
    %211 = math.exp %210 : vector<2x128xf32>
    %cst_43 = arith.constant 1.000000e+00 : f32
    %212 = vector.broadcast %cst_43 : f32 to vector<2x128xf32>
    %213 = arith.addf %212, %211 : vector<2x128xf32>
    %214 = arith.divf %212, %213 : vector<2x128xf32>
    %215 = math.tanh %209 : vector<2x128xf32>
    %216 = vector.extract_strided_slice %214 {offsets = [0, 0], sizes = [2, 32], strides = [1, 1]} : vector<2x128xf32> to vector<2x32xf32>
    %217 = vector.extract_strided_slice %214 {offsets = [0, 32], sizes = [2, 32], strides = [1, 1]} : vector<2x128xf32> to vector<2x32xf32>
    %218 = vector.extract_strided_slice %215 {offsets = [0, 64], sizes = [2, 32], strides = [1, 1]} : vector<2x128xf32> to vector<2x32xf32>
    %219 = vector.extract_strided_slice %214 {offsets = [0, 96], sizes = [2, 32], strides = [1, 1]} : vector<2x128xf32> to vector<2x32xf32>
    %220 = arith.mulf %217, %203 : vector<2x32xf32>
    %221 = arith.mulf %216, %218 : vector<2x32xf32>
    %222 = arith.addf %220, %221 : vector<2x32xf32>
    %223 = math.tanh %222 : vector<2x32xf32>
    %224 = arith.mulf %219, %223 : vector<2x32xf32>
    %225 = vector.extract_strided_slice %184 {offsets = [0, 2, 0], sizes = [2, 1, 128], strides = [1, 1, 1]} : vector<2x8x128xf32> to vector<2x1x128xf32>
    %226 = vector.shape_cast %225 : vector<2x1x128xf32> to vector<2x128xf32>
    %cst_44 = arith.constant dense<0.000000e+00> : vector<2x128xf32>
    %227 = tpu.matmul %224, %179, %cst_44 {dimension_numbers = #tpu.dot_dimension_numbers<[1], [0], [0], [1], [0, 0, 1, 1], [], []>} : vector<2x32xf32>, vector<32x128xf32>, vector<2x128xf32> -> vector<2x128xf32>
    %228 = arith.addf %226, %227 : vector<2x128xf32>
    %229 = arith.negf %228 : vector<2x128xf32>
    %230 = math.exp %229 : vector<2x128xf32>
    %cst_45 = arith.constant 1.000000e+00 : f32
    %231 = vector.broadcast %cst_45 : f32 to vector<2x128xf32>
    %232 = arith.addf %231, %230 : vector<2x128xf32>
    %233 = arith.divf %231, %232 : vector<2x128xf32>
    %234 = math.tanh %228 : vector<2x128xf32>
    %235 = vector.extract_strided_slice %233 {offsets = [0, 0], sizes = [2, 32], strides = [1, 1]} : vector<2x128xf32> to vector<2x32xf32>
    %236 = vector.extract_strided_slice %233 {offsets = [0, 32], sizes = [2, 32], strides = [1, 1]} : vector<2x128xf32> to vector<2x32xf32>
    %237 = vector.extract_strided_slice %234 {offsets = [0, 64], sizes = [2, 32], strides = [1, 1]} : vector<2x128xf32> to vector<2x32xf32>
    %238 = vector.extract_strided_slice %233 {offsets = [0, 96], sizes = [2, 32], strides = [1, 1]} : vector<2x128xf32> to vector<2x32xf32>
    %239 = arith.mulf %236, %222 : vector<2x32xf32>
    %240 = arith.mulf %235, %237 : vector<2x32xf32>
    %241 = arith.addf %239, %240 : vector<2x32xf32>
    %242 = math.tanh %241 : vector<2x32xf32>
    %243 = arith.mulf %238, %242 : vector<2x32xf32>
    %244 = vector.extract_strided_slice %184 {offsets = [0, 3, 0], sizes = [2, 1, 128], strides = [1, 1, 1]} : vector<2x8x128xf32> to vector<2x1x128xf32>
    %245 = vector.shape_cast %244 : vector<2x1x128xf32> to vector<2x128xf32>
    %cst_46 = arith.constant dense<0.000000e+00> : vector<2x128xf32>
    %246 = tpu.matmul %243, %179, %cst_46 {dimension_numbers = #tpu.dot_dimension_numbers<[1], [0], [0], [1], [0, 0, 1, 1], [], []>} : vector<2x32xf32>, vector<32x128xf32>, vector<2x128xf32> -> vector<2x128xf32>
    %247 = arith.addf %245, %246 : vector<2x128xf32>
    %248 = arith.negf %247 : vector<2x128xf32>
    %249 = math.exp %248 : vector<2x128xf32>
    %cst_47 = arith.constant 1.000000e+00 : f32
    %250 = vector.broadcast %cst_47 : f32 to vector<2x128xf32>
    %251 = arith.addf %250, %249 : vector<2x128xf32>
    %252 = arith.divf %250, %251 : vector<2x128xf32>
    %253 = math.tanh %247 : vector<2x128xf32>
    %254 = vector.extract_strided_slice %252 {offsets = [0, 0], sizes = [2, 32], strides = [1, 1]} : vector<2x128xf32> to vector<2x32xf32>
    %255 = vector.extract_strided_slice %252 {offsets = [0, 32], sizes = [2, 32], strides = [1, 1]} : vector<2x128xf32> to vector<2x32xf32>
    %256 = vector.extract_strided_slice %253 {offsets = [0, 64], sizes = [2, 32], strides = [1, 1]} : vector<2x128xf32> to vector<2x32xf32>
    %257 = vector.extract_strided_slice %252 {offsets = [0, 96], sizes = [2, 32], strides = [1, 1]} : vector<2x128xf32> to vector<2x32xf32>
    %258 = arith.mulf %255, %241 : vector<2x32xf32>
    %259 = arith.mulf %254, %256 : vector<2x32xf32>
    %260 = arith.addf %258, %259 : vector<2x32xf32>
    %261 = math.tanh %260 : vector<2x32xf32>
    %262 = arith.mulf %257, %261 : vector<2x32xf32>
    %263 = vector.extract_strided_slice %184 {offsets = [0, 4, 0], sizes = [2, 1, 128], strides = [1, 1, 1]} : vector<2x8x128xf32> to vector<2x1x128xf32>
    %264 = vector.shape_cast %263 : vector<2x1x128xf32> to vector<2x128xf32>
    %cst_48 = arith.constant dense<0.000000e+00> : vector<2x128xf32>
    %265 = tpu.matmul %262, %179, %cst_48 {dimension_numbers = #tpu.dot_dimension_numbers<[1], [0], [0], [1], [0, 0, 1, 1], [], []>} : vector<2x32xf32>, vector<32x128xf32>, vector<2x128xf32> -> vector<2x128xf32>
    %266 = arith.addf %264, %265 : vector<2x128xf32>
    %267 = arith.negf %266 : vector<2x128xf32>
    %268 = math.exp %267 : vector<2x128xf32>
    %cst_49 = arith.constant 1.000000e+00 : f32
    %269 = vector.broadcast %cst_49 : f32 to vector<2x128xf32>
    %270 = arith.addf %269, %268 : vector<2x128xf32>
    %271 = arith.divf %269, %270 : vector<2x128xf32>
    %272 = math.tanh %266 : vector<2x128xf32>
    %273 = vector.extract_strided_slice %271 {offsets = [0, 0], sizes = [2, 32], strides = [1, 1]} : vector<2x128xf32> to vector<2x32xf32>
    %274 = vector.extract_strided_slice %271 {offsets = [0, 32], sizes = [2, 32], strides = [1, 1]} : vector<2x128xf32> to vector<2x32xf32>
    %275 = vector.extract_strided_slice %272 {offsets = [0, 64], sizes = [2, 32], strides = [1, 1]} : vector<2x128xf32> to vector<2x32xf32>
    %276 = vector.extract_strided_slice %271 {offsets = [0, 96], sizes = [2, 32], strides = [1, 1]} : vector<2x128xf32> to vector<2x32xf32>
    %277 = arith.mulf %274, %260 : vector<2x32xf32>
    %278 = arith.mulf %273, %275 : vector<2x32xf32>
    %279 = arith.addf %277, %278 : vector<2x32xf32>
    %280 = math.tanh %279 : vector<2x32xf32>
    %281 = arith.mulf %276, %280 : vector<2x32xf32>
    %282 = vector.extract_strided_slice %184 {offsets = [0, 5, 0], sizes = [2, 1, 128], strides = [1, 1, 1]} : vector<2x8x128xf32> to vector<2x1x128xf32>
    %283 = vector.shape_cast %282 : vector<2x1x128xf32> to vector<2x128xf32>
    %cst_50 = arith.constant dense<0.000000e+00> : vector<2x128xf32>
    %284 = tpu.matmul %281, %179, %cst_50 {dimension_numbers = #tpu.dot_dimension_numbers<[1], [0], [0], [1], [0, 0, 1, 1], [], []>} : vector<2x32xf32>, vector<32x128xf32>, vector<2x128xf32> -> vector<2x128xf32>
    %285 = arith.addf %283, %284 : vector<2x128xf32>
    %286 = arith.negf %285 : vector<2x128xf32>
    %287 = math.exp %286 : vector<2x128xf32>
    %cst_51 = arith.constant 1.000000e+00 : f32
    %288 = vector.broadcast %cst_51 : f32 to vector<2x128xf32>
    %289 = arith.addf %288, %287 : vector<2x128xf32>
    %290 = arith.divf %288, %289 : vector<2x128xf32>
    %291 = math.tanh %285 : vector<2x128xf32>
    %292 = vector.extract_strided_slice %290 {offsets = [0, 0], sizes = [2, 32], strides = [1, 1]} : vector<2x128xf32> to vector<2x32xf32>
    %293 = vector.extract_strided_slice %290 {offsets = [0, 32], sizes = [2, 32], strides = [1, 1]} : vector<2x128xf32> to vector<2x32xf32>
    %294 = vector.extract_strided_slice %291 {offsets = [0, 64], sizes = [2, 32], strides = [1, 1]} : vector<2x128xf32> to vector<2x32xf32>
    %295 = vector.extract_strided_slice %290 {offsets = [0, 96], sizes = [2, 32], strides = [1, 1]} : vector<2x128xf32> to vector<2x32xf32>
    %296 = arith.mulf %293, %279 : vector<2x32xf32>
    %297 = arith.mulf %292, %294 : vector<2x32xf32>
    %298 = arith.addf %296, %297 : vector<2x32xf32>
    %299 = math.tanh %298 : vector<2x32xf32>
    %300 = arith.mulf %295, %299 : vector<2x32xf32>
    %301 = vector.extract_strided_slice %184 {offsets = [0, 6, 0], sizes = [2, 1, 128], strides = [1, 1, 1]} : vector<2x8x128xf32> to vector<2x1x128xf32>
    %302 = vector.shape_cast %301 : vector<2x1x128xf32> to vector<2x128xf32>
    %cst_52 = arith.constant dense<0.000000e+00> : vector<2x128xf32>
    %303 = tpu.matmul %300, %179, %cst_52 {dimension_numbers = #tpu.dot_dimension_numbers<[1], [0], [0], [1], [0, 0, 1, 1], [], []>} : vector<2x32xf32>, vector<32x128xf32>, vector<2x128xf32> -> vector<2x128xf32>
    %304 = arith.addf %302, %303 : vector<2x128xf32>
    %305 = arith.negf %304 : vector<2x128xf32>
    %306 = math.exp %305 : vector<2x128xf32>
    %cst_53 = arith.constant 1.000000e+00 : f32
    %307 = vector.broadcast %cst_53 : f32 to vector<2x128xf32>
    %308 = arith.addf %307, %306 : vector<2x128xf32>
    %309 = arith.divf %307, %308 : vector<2x128xf32>
    %310 = math.tanh %304 : vector<2x128xf32>
    %311 = vector.extract_strided_slice %309 {offsets = [0, 0], sizes = [2, 32], strides = [1, 1]} : vector<2x128xf32> to vector<2x32xf32>
    %312 = vector.extract_strided_slice %309 {offsets = [0, 32], sizes = [2, 32], strides = [1, 1]} : vector<2x128xf32> to vector<2x32xf32>
    %313 = vector.extract_strided_slice %310 {offsets = [0, 64], sizes = [2, 32], strides = [1, 1]} : vector<2x128xf32> to vector<2x32xf32>
    %314 = vector.extract_strided_slice %309 {offsets = [0, 96], sizes = [2, 32], strides = [1, 1]} : vector<2x128xf32> to vector<2x32xf32>
    %315 = arith.mulf %312, %298 : vector<2x32xf32>
    %316 = arith.mulf %311, %313 : vector<2x32xf32>
    %317 = arith.addf %315, %316 : vector<2x32xf32>
    %318 = math.tanh %317 : vector<2x32xf32>
    %319 = arith.mulf %314, %318 : vector<2x32xf32>
    %320 = vector.extract_strided_slice %184 {offsets = [0, 7, 0], sizes = [2, 1, 128], strides = [1, 1, 1]} : vector<2x8x128xf32> to vector<2x1x128xf32>
    %321 = vector.shape_cast %320 : vector<2x1x128xf32> to vector<2x128xf32>
    %cst_54 = arith.constant dense<0.000000e+00> : vector<2x128xf32>
    %322 = tpu.matmul %319, %179, %cst_54 {dimension_numbers = #tpu.dot_dimension_numbers<[1], [0], [0], [1], [0, 0, 1, 1], [], []>} : vector<2x32xf32>, vector<32x128xf32>, vector<2x128xf32> -> vector<2x128xf32>
    %323 = arith.addf %321, %322 : vector<2x128xf32>
    %324 = arith.negf %323 : vector<2x128xf32>
    %325 = math.exp %324 : vector<2x128xf32>
    %cst_55 = arith.constant 1.000000e+00 : f32
    %326 = vector.broadcast %cst_55 : f32 to vector<2x128xf32>
    %327 = arith.addf %326, %325 : vector<2x128xf32>
    %328 = arith.divf %326, %327 : vector<2x128xf32>
    %329 = math.tanh %323 : vector<2x128xf32>
    %330 = vector.extract_strided_slice %328 {offsets = [0, 0], sizes = [2, 32], strides = [1, 1]} : vector<2x128xf32> to vector<2x32xf32>
    %331 = vector.extract_strided_slice %328 {offsets = [0, 32], sizes = [2, 32], strides = [1, 1]} : vector<2x128xf32> to vector<2x32xf32>
    %332 = vector.extract_strided_slice %329 {offsets = [0, 64], sizes = [2, 32], strides = [1, 1]} : vector<2x128xf32> to vector<2x32xf32>
    %333 = vector.extract_strided_slice %328 {offsets = [0, 96], sizes = [2, 32], strides = [1, 1]} : vector<2x128xf32> to vector<2x32xf32>
    %334 = arith.mulf %331, %317 : vector<2x32xf32>
    %335 = arith.mulf %330, %332 : vector<2x32xf32>
    %336 = arith.addf %334, %335 : vector<2x32xf32>
    %337 = math.tanh %336 : vector<2x32xf32>
    %338 = arith.mulf %333, %337 : vector<2x32xf32>
    %339 = vector.shape_cast %205 : vector<2x32xf32> to vector<2x1x32xf32>
    %340 = vector.shape_cast %224 : vector<2x32xf32> to vector<2x1x32xf32>
    %341 = vector.shape_cast %243 : vector<2x32xf32> to vector<2x1x32xf32>
    %342 = vector.shape_cast %262 : vector<2x32xf32> to vector<2x1x32xf32>
    %343 = vector.shape_cast %281 : vector<2x32xf32> to vector<2x1x32xf32>
    %344 = vector.shape_cast %300 : vector<2x32xf32> to vector<2x1x32xf32>
    %345 = vector.shape_cast %319 : vector<2x32xf32> to vector<2x1x32xf32>
    %346 = vector.shape_cast %338 : vector<2x32xf32> to vector<2x1x32xf32>
    %347 = tpu.concatenate %339, %340, %341, %342, %343, %344, %345, %346 in 1 : vector<2x1x32xf32>, vector<2x1x32xf32>, vector<2x1x32xf32>, vector<2x1x32xf32>, vector<2x1x32xf32>, vector<2x1x32xf32>, vector<2x1x32xf32>, vector<2x1x32xf32> -> vector<2x8x32xf32>
    %348 = vector.shape_cast %347 : vector<2x8x32xf32> to vector<16x32xf32>
    %c1 = arith.constant 1 : index
    %c0_56 = arith.constant 0 : index
    %c0_57 = arith.constant 0 : index
    %349 = vector.load %arg8[%c1, %c0_56, %c0_57] : memref<2x2x32xf32, #tpu.memory_space<vmem>>, vector<1x2x32xf32>
    %350 = vector.shape_cast %349 : vector<1x2x32xf32> to vector<2x32xf32>
    %351 = vector.shape_cast %338 : vector<2x32xf32> to vector<1x2x32xf32>
    tpu.vector_store %arg8[%c1, %c0_56, %c0_57], %351 {strides = array<i32>} : memref<2x2x32xf32, #tpu.memory_space<vmem>>, vector<1x2x32xf32>,
    %c1_58 = arith.constant 1 : index
    %c0_59 = arith.constant 0 : index
    %c0_60 = arith.constant 0 : index
    %352 = vector.load %arg9[%c1_58, %c0_59, %c0_60] : memref<2x2x32xf32, #tpu.memory_space<vmem>>, vector<1x2x32xf32>
    %353 = vector.shape_cast %352 : vector<1x2x32xf32> to vector<2x32xf32>
    %354 = vector.shape_cast %336 : vector<2x32xf32> to vector<1x2x32xf32>
    tpu.vector_store %arg9[%c1_58, %c0_59, %c0_60], %354 {strides = array<i32>} : memref<2x2x32xf32, #tpu.memory_space<vmem>>, vector<1x2x32xf32>,
    %c0_61 = arith.constant 0 : index
    %c0_62 = arith.constant 0 : index
    %355 = vector.load %arg7[%c0_61, %c0_62] : memref<16x32xf32, #tpu.memory_space<vmem>>, vector<16x32xf32>
    tpu.vector_store %arg7[%c0_61, %c0_62], %348 {strides = array<i32>} : memref<16x32xf32, #tpu.memory_space<vmem>>, vector<16x32xf32>,
    return
  }
}

</mosaic_0001>

<bundles_post_ra>
// kernel: _encoder_forward.1
= control target key start
LH: loop header
LB: loop body
LE: loop exit
PB: predicated region body
PF: predicated region fallthrough
CT: control target
= control target key end

     0   :  { %15 = vsyncpa [#allocation3], 0  ;;  %s4073_s0 = inlined_call_operand.hbm [shape: f32[16,16], index: 0, kind: input, shape index: {}]   ;;  %s4074_s1 = inlined_call_operand.hbm [shape: f32[16,128], index: 1, kind: input, shape index: {}]   ;;  %s4075_s2 = inlined_call_operand.hbm [shape: f32[32,128], index: 2, kind: input, shape index: {}]   ;;  %s4076_s3 = inlined_call_operand.vmem [shape: f32[1,128], index: 3, kind: input, shape index: {}]   ;;  %s4077_s4 = inlined_call_operand.hbm [shape: f32[32,128], index: 4, kind: input, shape index: {}]   ;;  %s4078_s5 = inlined_call_operand.hbm [shape: f32[32,128], index: 5, kind: input, shape index: {}]   ;;  %s4079_s6 = inlined_call_operand.vmem [shape: f32[1,128], index: 6, kind: input, shape index: {}]   ;;  %s4080_s7 = inlined_call_operand.hbm [shape: f32[16,32], index: 7, kind: output, shape index: {0}]   ;;  %s4081_s8 = inlined_call_operand.hbm [shape: f32[2,2,32], index: 8, kind: output, shape index: {1}]   ;;  %s4082_s9 = inlined_call_operand.hbm [shape: f32[2,2,32], index: 9, kind: output, shape index: {2}]  }
   0x1   :  { %16 = vsyncpa [#allocation6], 0 }
   0x2   :  { %17 = vsyncpa [#allocation9], 0 }
   0x3   :  { %18 = vsyncpa [#allocation4], 0 }
   0x4   :  { %19 = vsyncpa [#allocation13], 0  ;;  %s3424_s30 = smov [#allocation5]   ;;  %s3425_s11 = smov [#allocation8]  }
   0x5   :  { %s37_s10 = sshll.u32 %s3424_s30, 4  ;;  %s63_s12 = sshll.u32 %s3425_s11, 4  ;;  %s38_s10 = int_to_ptr.vmem [resolvable:$true] %s37_s10  ;;  %s64_s12 = int_to_ptr.vmem [resolvable:$true] %s63_s12 }
   0x6   :  { %s3262_s13 = scalar_lea.vmem %s38_s10, 256  ;;  %p3267_p1 = scmp.lt.s32.totalorder %s38_s10, %s38_s10 }
   0x7   :  { %p3263_p0 = scmp.ne.s32.totalorder %s38_s10, %s3262_s13  ;;  %p3268_p2 = scmp.lt.s32.totalorder %s3262_s13, %s3262_s13 }
   0x9   :  { %p3269_p3 = por %p3268_p2, %p3267_p1 }
   0xb   :  { %p3270_p4 = pnand %p3269_p3, %p3263_p0 }
   0xd   :  { %3273 = shalt.err (!%p3270_p4)
}
   0xe   :  { %s3426_s14 = smov 128   ;;  %s3427_s15 = smov 8  }
   0xf   :  { %43 = dma.hbm_to_vmem [thread:$0]  %s4074_s1, 256, %s38_s10, [#allocation6], %s3426_s14, %s3426_s14, %s3427_s15  }
  0x10   :  { %s3282_s18 = scalar_lea.vmem %s64_s12, 512  ;;  %p3287_p6 = scmp.lt.s32.totalorder %s64_s12, %s64_s12 }
  0x11   :  { %p3283_p5 = scmp.ne.s32.totalorder %s64_s12, %s3282_s18  ;;  %p3288_p7 = scmp.lt.s32.totalorder %s3282_s18, %s3282_s18 }
  0x13   :  { %p3289_p8 = por %p3288_p7, %p3287_p6 }
  0x15   :  { %p3290_p9 = pnand %p3289_p8, %p3283_p5 }
  0x17   :  { %3293 = shalt.err (!%p3290_p9)
}
  0x18   :  { %69 = dma.hbm_to_vmem [thread:$0]  %s4077_s4, 512, %s64_s12, [#allocation9], %s3426_s14, %s3426_s14, %s3427_s15  }
  0x19   :  { %s3428_s21 = smov [#allocation2]   ;;  %s3429_s23 = smov [#allocation7]  }
  0x1a   :  { %s25_s22 = sshll.u32 %s3428_s21, 4  ;;  %s49_s24 = sshll.u32 %s3429_s23, 4  ;;  %s26_s22 = int_to_ptr.vmem [resolvable:$true] %s25_s22  ;;  %s50_s24 = int_to_ptr.vmem [resolvable:$true] %s49_s24 }
  0x1b   :  { %s3302_s1 = scalar_lea.vmem %s26_s22, 256  ;;  %p3307_p11 = scmp.lt.s32.totalorder %s26_s22, %s26_s22 }
  0x1c   :  { %p3303_p10 = scmp.ne.s32.totalorder %s26_s22, %s3302_s1  ;;  %p3308_p12 = scmp.lt.s32.totalorder %s3302_s1, %s3302_s1 }
  0x1e   :  { %p3309_p13 = por %p3308_p12, %p3307_p11 }
  0x20   :  { %p3310_p0 = pnand %p3309_p13, %p3303_p10 }
  0x22   :  { %3313 = shalt.err (!%p3310_p0)
}
  0x23   :  { %31 = dma.hbm_to_vmem [thread:$0]  %s4073_s0, 256, %s26_s22, [#allocation3], %s3426_s14, %s3426_s14, %s3427_s15  }
  0x24   :  { %s3322_s4 = scalar_lea.vmem %s50_s24, 512  ;;  %p3327_p2 = scmp.lt.s32.totalorder %s50_s24, %s50_s24 }
  0x25   :  { %p3323_p1 = scmp.ne.s32.totalorder %s50_s24, %s3322_s4  ;;  %p3328_p3 = scmp.lt.s32.totalorder %s3322_s4, %s3322_s4 }
  0x27   :  { %p3329_p4 = por %p3328_p3, %p3327_p2 }
  0x29   :  { %p3330_p5 = pnand %p3329_p4, %p3323_p1 }
  0x2b   :  { %3333 = shalt.err (!%p3330_p5)
}
  0x2c   :  { %55 = dma.hbm_to_vmem [thread:$0]  %s4075_s2, 512, %s50_s24, [#allocation6], %s3426_s14, %s3426_s14, %s3427_s15  }
  0x2d   :  { %s3430_s29 = smov [#allocation10]  }
  0x2e   :  { %s75_s30 = sshll.u32 %s3430_s29, 4  ;;  %s76_s30 = int_to_ptr.vmem [resolvable:$true] %s75_s30 }
  0x2f   :  { %s3342_s10 = scalar_lea.vmem %s76_s30, 512  ;;  %p3347_p7 = scmp.lt.s32.totalorder %s76_s30, %s76_s30 }
  0x30   :  { %p3343_p6 = scmp.ne.s32.totalorder %s76_s30, %s3342_s10  ;;  %p3348_p8 = scmp.lt.s32.totalorder %s3342_s10, %s3342_s10 }
  0x32   :  { %p3349_p9 = por %p3348_p8, %p3347_p7 }
  0x34   :  { %p3350_p10 = pnand %p3349_p9, %p3343_p6 }
  0x36   :  { %3353 = shalt.err (!%p3350_p10)
}
  0x37   :  { %81 = dma.hbm_to_vmem [thread:$0]  %s4078_s5, 512, %s76_s30, [#allocation9], %s3426_s14, %s3426_s14, %s3427_s15  }
  0x38   :  { %3414 = dma.done.wait [#allocation3], 256  }
  0x39   :  { %3415 = vsyncadd [#allocation3], 4294967040 }
  0x3a   :  { %3416 = dma.done.wait [#allocation6], 768  }
  0x3b   :  { %3417 = vsyncadd [#allocation6], 4294966528 }
  0x3c   :  { %3418 = dma.done.wait [#allocation9], 1024  }
  0x3d   :  { %3419 = vsyncadd [#allocation9], 4294966272  ;;  %v3431_v0 = vmov 0.0   ;;  %vm3432_vm0 = vmmov 0   ;;  %v102_v1 = vld [vmem:[#allocation5 + $0x8] sm:$0xff]  ;;  %v101_v3 = vld [vmem:[#allocation5] sm:$0xff] }
  0x3e   :  { %2795 = vmatprep.subr.mxu1 %v3431_v0  ;;  %2803 = vmatprep.mubr.msk.f32.mxu1 %vm3432_vm0, %v3431_v0  ;;  %v3523_v2 = vld [vmem:[#allocation7 + $0x18] sm:$0xff]  ;;  %v3526_v4 = vld [vmem:[#allocation7 + $0x10] sm:$0xff]  ;;  %v99_v5 = vld [vmem:[#allocation2] sm:$0xff]  ;;  %vm114_vm1 = vcmask 130048   ;;  %s3433_s12 = smov 64   ;;  %vm327_vm2 = vcmask 1041409  }
  0x3f   :  { %2788 = vmatprep.subr.mxu0 %v102_v1  ;;  %2796 = vmatpush3.msra.mxu1 %v3523_v2  ;;  %v100_v6 = vld [vmem:[#allocation2 + $0x8] sm:$0xff]  ;;  %v3533_v8 = vld [vmem:[#allocation7] sm:$0xff]  ;;  %vm196_vm3 = vcmask 261120   ;;  %vm1302_vm4 = vcmask 1040384   ;;  %vm1305_vm5 = vcmask 1041408   ;;  %vm1308_vm6 = vcmask 1042432  }
  0x40   :  { %2789 = vmatpush3.msra.mxu0 %v102_v1  ;;  %2797 = vmatprep.subr.mxu1 %v3431_v0  ;;  %v3530_v7 = vld [vmem:[#allocation7 + $0x8] sm:$0xff]  ;;  %v2646_v10 = vld [vmem:[%s4076_s3] ss:$0 sm:$0xff]  ;;  %s3434_s3 = smov 32   ;;  %vm1311_vm7 = vcmask 1043456   ;;  %vm1314_vm8 = vcmask 1044480  }
  0x41   :  { %2790 = vmatprep.subr.mxu0 %v101_v3  ;;  %2798 = vmatpush3.msra.mxu1 %v3526_v4  ;;  %vm1317_vm9 = vcmask 1045504   ;;  %vm1320_vm10 = vcmask 1046528   ;;  %vm1334_vm11 = vcmask 253952   ;;  %vm1332_vm12 = vcmask 261127   ;;  %s3436_s17 = smov [#allocation12]   ;;  %s3437_s19 = smov [#allocation14]  }
  0x42   :  { %2791 = vmatpush3.msra.mxu0 %v101_v3  ;;  %2792 = vmatprep.mubr.msk.f32.mxu0 %vm114_vm1, %v99_v5  ;;  %s2613_s18 = sshll.u32 %s3436_s17, 4  ;;  %s2625_s20 = sshll.u32 %s3437_s19, 4  ;;  %s2614_s18 = int_to_ptr.vmem [resolvable:$true] %s2613_s18  ;;  %s2626_s20 = int_to_ptr.vmem [resolvable:$true] %s2625_s20 }
  0x43   :  { %2799 = vmatprep.subr.mxu1 %v3431_v0  ;;  %2793 = vmatmul.mubr.msk.f32.vlgmr.msra.gmra.mxu0 %vm114_vm1, %v100_v6  ;;  %s3438_s21 = smov [#allocation11]   ;;  %s3354_s23 = scalar_lea.vmem %s2614_s18, 64 }
  0x44   :  { %2800 = vmatpush3.msra.mxu1 %v3530_v7  ;;  %2806 = vmatprep.subr.mxu0 %v3431_v0  ;;  %s2601_s22 = sshll.u32 %s3438_s21, 4  ;;  %p3355_p11 = scmp.ne.s32.totalorder %s2614_s18, %s3354_s23  ;;  %s4048_s22 = int_to_ptr.vmem [resolvable:$true] %s2601_s22 }
  0x45   :  { %2801 = vmatprep.subr.mxu1 %v3431_v0  ;;  %2807 = vmatpush3.msra.mxu0 %v3523_v2  ;;  %p3359_p12 = scmp.lt.s32.totalorder %s2614_s18, %s2614_s18  ;;  %p3360_p13 = scmp.lt.s32.totalorder %s3354_s23, %s3354_s23 }
  0x46   :  { %2802 = vmatpush3.msra.mxu1 %v3533_v8  ;;  %2808 = vmatprep.subr.mxu0 %v3431_v0 }
  0x47   :  { %2804 = vmatmul.mubr.f32.vlgmr.msra.gmra.mxu1 %v3431_v0  ;;  %2809 = vmatpush3.msra.mxu0 %v3526_v4  ;;  %p3361_p0 = por %p3360_p13, %p3359_p12 }
  0x48   :  { %2810 = vmatprep.subr.mxu0 %v3431_v0  ;;  %2814 = vmatprep.mubr.msk.f32.mxu0 %vm3432_vm0, %v3431_v0 }
  0x49   :  { %2811 = vmatpush3.msra.mxu0 %v3530_v7  ;;  %2817 = vmatprep.subr.mxu1 %v3431_v0  ;;  %p3362_p1 = pnand %p3361_p0, %p3355_p11 }
  0x4a   :  { %2812 = vmatprep.subr.mxu0 %v3431_v0  ;;  %2818 = vmatpush3.msra.mxu1 %v3523_v2 }
  0x4b   :  { %2813 = vmatpush3.msra.mxu0 %v3533_v8  ;;  %2819 = vmatprep.subr.mxu1 %v3431_v0 }
  0x4c   :  { %2820 = vmatpush3.msra.mxu1 %v3526_v4  ;;  %2825 = vmatprep.mubr.msk.f32.mxu1 %vm3432_vm0, %v3431_v0 }
  0x4d   :  { %2821 = vmatprep.subr.mxu1 %v3431_v0  ;;  %2828 = vmatprep.subr.mxu0 %v3431_v0 }
  0x4e   :  { %2822 = vmatpush3.msra.mxu1 %v3530_v7 }
  0x4f   :  { %2823 = vmatprep.subr.mxu1 %v3431_v0 }
  0x50   :  { %2824 = vmatpush3.msra.mxu1 %v3533_v8 }
  0x51   :  { %2839 = vmatprep.subr.mxu1 %v3431_v0 }
 0x103   :  { %v2794_v9 = vpop.f32.mrf.mxu0 }
 0x104   :  { %v3564_v11 = vadd.f32 %v2794_v9, %v2646_v10 }
 0x105   :  { %v187_v12 = vpop.f32.mrf.mxu0 }
 0x106   :  { %v3566_v15 = vadd.f32 %v2646_v10, %v187_v12 }
 0x107   :  { %v266_v13 = vpop.f32.mrf.mxu1 }
 0x108   :  { %v271_v14 = vrot.slane %v266_v13, 1  ;;  %v274_v18 = vadd.f32 %v266_v13, %v3566_v15 }
 0x109   :  { %v2805_v16 = vpop.f32.mrf.mxu1 }
 0x10a   :  { %v275_v17 = vadd.f32 %v271_v14, %v3564_v11  ;;  %v2649_v22 = vmul.f32 -1.442695, %v274_v18 }
 0x10c   :  { %2998 = vtanh.f32 %v275_v17  ;;  %v2650_v21 = vmul.f32 -1.442695, %v275_v17 }
 0x10d   :  { %3000 = vtanh.f32 %v274_v18 }
 0x10e   :  { %3002 = vpow2.f32 %v2650_v21 }
 0x10f   :  { %3004 = vpow2.f32 %v2649_v22 }
 0x119   :  { %v2999_v19 = vpop.eup %2998 }
 0x11a   :  { %296 = vrot.lane.b32.xlu0 %v2999_v19, %s3433_s12  ;;  %v3001_v20 = vpop.eup %3000 }
 0x11b   :  { %v3003_v23 = vpop.eup %3002 }
 0x11c   :  { %v283_v24 = vadd.f32 1.0, %v3003_v23  ;;  %v3005_v25 = vpop.eup %3004 }
 0x11d   :  { %v282_v26 = vadd.f32 1.0, %v3005_v25 }
 0x11e   :  { %294 = vrot.lane.b32.xlu0 %v3001_v20, %s3433_s12  ;;  %3006 = vrcp.f32 %v283_v24 }
 0x11f   :  { %3008 = vrcp.f32 %v282_v26 }
 0x12b   :  { %v3007_v27 = vpop.eup %3006 }
 0x12c   :  { %v3009_v30 = vpop.eup %3008  ;;  %v291_v33 = vmul.f32 0.0, %v3007_v27 }
 0x12d   :  { %v290_v36 = vmul.f32 0.0, %v3009_v30 }
 0x18c   :  { %v297_v28 = vpop.permute.xlu0 %296 }
 0x18d   :  { %v301_v29 = vmul.f32 %v3007_v27, %v297_v28 }
 0x18f   :  { %306 = vrot.lane.b32.xlu1 %v301_v29, %s3434_s3 }
 0x190   :  { %v295_v31 = vpop.permute.xlu0 %294 }
 0x191   :  { %v300_v32 = vmul.f32 %v3009_v30, %v295_v31 }
 0x193   :  { %304 = vrot.lane.b32.xlu1 %v300_v32, %s3434_s3 }
 0x201   :  { %v307_v34 = vpop.permute.xlu1 %306 }
 0x202   :  { %v311_v35 = vadd.f32 %v307_v34, %v291_v33 }
 0x204   :  { %3010 = vtanh.f32 %v311_v35  ;;  %v426_v6 = vrot.slane %v311_v35, 7 }
 0x205   :  { %v305_v37 = vpop.permute.xlu1 %304 }
 0x206   :  { %v310_v38 = vadd.f32 %v305_v37, %v290_v36 }
 0x208   :  { %3012 = vtanh.f32 %v310_v38  ;;  %v425_v10 = vrot.slane %v310_v38, 7 }
 0x211   :  { %v3011_v39 = vpop.eup %3010 }
 0x212   :  { %318 = vrot.lane.b32.xlu0 %v3011_v39, %s3433_s12 }
 0x215   :  { %v3013_v40 = vpop.eup %3012 }
 0x216   :  { %316 = vrot.lane.b32.xlu1 %v3013_v40, %s3433_s12 }
 0x284   :  { %v319_v41 = vpop.permute.xlu0 %318 }
 0x285   :  { %v3576_v42 = vmul.f32 %v3007_v27, %v319_v41 }
 0x287   :  { %v326_v44 = vrot.slane %v3576_v42, 7 }
 0x288   :  { %v317_v43 = vpop.permute.xlu1 %316 }
 0x289   :  { %v3579_v45 = vmul.f32 %v3009_v30, %v317_v43 }
 0x28b   :  { %v328_v46 = vsel %vm327_vm2, %v326_v44, %v3579_v45 }
 0x28c   :  { %329 = vrot.lane.b32.xlu0 %v328_v46, %s3434_s3 }
 0x2fe   :  { %v330_v47 = vpop.permute.xlu0 %329 }
 0x2ff   :  { %2815 = vmatmul.mubr.msk.f32.vlgmr.msra.gmra.mxu0 %vm196_vm3, %v330_v47 }
 0x300   :  { %2829 = vmatpush3.msra.mxu0 %v3523_v2  ;;  %2836 = vmatprep.mubr.msk.f32.mxu0 %vm3432_vm0, %v3431_v0 }
 0x301   :  { %2830 = vmatprep.subr.mxu0 %v3431_v0 }
 0x302   :  { %2831 = vmatpush3.msra.mxu0 %v3526_v4 }
 0x303   :  { %2832 = vmatprep.subr.mxu0 %v3431_v0 }
 0x304   :  { %2833 = vmatpush3.msra.mxu0 %v3530_v7 }
 0x305   :  { %2834 = vmatprep.subr.mxu0 %v3431_v0 }
 0x306   :  { %2835 = vmatpush3.msra.mxu0 %v3533_v8 }
 0x307   :  { %2850 = vmatprep.subr.mxu0 %v3431_v0 }
 0x3bf   :  { %v399_v48 = vpop.f32.mrf.mxu0 }
 0x3c0   :  { %v404_v49 = vrot.slane %v399_v48, 7  ;;  %v408_v50 = vadd.f32 %v399_v48, %v3564_v11 }
 0x3c1   :  { %v2816_v51 = vpop.f32.mrf.mxu0 }
 0x3c2   :  { %v407_v52 = vadd.f32 %v404_v49, %v3566_v15  ;;  %3014 = vtanh.f32 %v408_v50  ;;  %v2653_v55 = vmul.f32 -1.442695, %v408_v50 }
 0x3c4   :  { %3016 = vtanh.f32 %v407_v52  ;;  %v2652_v56 = vmul.f32 -1.442695, %v407_v52 }
 0x3c5   :  { %3018 = vpow2.f32 %v2653_v55 }
 0x3c6   :  { %3020 = vpow2.f32 %v2652_v56 }
 0x3cf   :  { %v3015_v53 = vpop.eup %3014 }
 0x3d0   :  { %435 = vrot.lane.b32.xlu0 %v3015_v53, %s3433_s12 }
 0x3d1   :  { %v3017_v54 = vpop.eup %3016 }
 0x3d2   :  { %433 = vrot.lane.b32.xlu1 %v3017_v54, %s3433_s12  ;;  %v3019_v57 = vpop.eup %3018 }
 0x3d3   :  { %v3021_v58 = vpop.eup %3020  ;;  %v416_v59 = vadd.f32 1.0, %v3019_v57 }
 0x3d4   :  { %v415_v60 = vadd.f32 1.0, %v3021_v58 }
 0x3d5   :  { %3022 = vrcp.f32 %v416_v59 }
 0x3d6   :  { %3024 = vrcp.f32 %v415_v60 }
 0x3e2   :  { %v3023_v61 = vpop.eup %3022 }
 0x3e3   :  { %v3025_v1 = vpop.eup %3024  ;;  %v430_v9 = vmul.f32 %v3023_v61, %v426_v6 }
 0x3e4   :  { %v429_v14 = vmul.f32 %v3025_v1, %v425_v10 }
 0x442   :  { %v436_v62 = vpop.permute.xlu0 %435 }
 0x443   :  { %v440_v63 = vmul.f32 %v3023_v61, %v436_v62 }
 0x444   :  { %v434_v3 = vpop.permute.xlu1 %433 }
 0x445   :  { %445 = vrot.lane.b32.xlu0 %v440_v63, %s3434_s3  ;;  %v439_v5 = vmul.f32 %v3025_v1, %v434_v3 }
 0x447   :  { %443 = vrot.lane.b32.xlu1 %v439_v5, %s3434_s3 }
 0x4b7   :  { %v446_v12 = vpop.permute.xlu0 %445 }
 0x4b8   :  { %v450_v13 = vadd.f32 %v446_v12, %v430_v9 }
 0x4b9   :  { %v444_v16 = vpop.permute.xlu1 %443 }
 0x4ba   :  { %3026 = vtanh.f32 %v450_v13  ;;  %v449_v17 = vadd.f32 %v444_v16, %v429_v14  ;;  %v565_v50 = vrot.slane %v450_v13, 7 }
 0x4bc   :  { %3028 = vtanh.f32 %v449_v17  ;;  %v564_v49 = vrot.slane %v449_v17, 7 }
 0x4c7   :  { %v3027_v18 = vpop.eup %3026 }
 0x4c8   :  { %457 = vrot.lane.b32.xlu0 %v3027_v18, %s3433_s12 }
 0x4c9   :  { %v3029_v19 = vpop.eup %3028 }
 0x4ca   :  { %455 = vrot.lane.b32.xlu1 %v3029_v19, %s3433_s12 }
 0x53a   :  { %v458_v20 = vpop.permute.xlu0 %457 }
 0x53b   :  { %v3605_v23 = vmul.f32 %v3023_v61, %v458_v20 }
 0x53c   :  { %v456_v21 = vpop.permute.xlu1 %455 }
 0x53d   :  { %v3603_v22 = vmul.f32 %v3025_v1, %v456_v21  ;;  %v1304_v1 = vsel %vm1302_vm4, %v3576_v42, %v3605_v23 }
 0x53f   :  { %v465_v24 = vrot.slane %v3603_v22, 1  ;;  %v1303_v62 = vsel %vm1302_vm4, %v3579_v45, %v3603_v22 }
 0x541   :  { %v466_v25 = vsel %vm327_vm2, %v3605_v23, %v465_v24 }
 0x542   :  { %467 = vrot.lane.b32.xlu1 %v466_v25, %s3434_s3 }
 0x5b4   :  { %v468_v26 = vpop.permute.xlu1 %467 }
 0x5b5   :  { %2826 = vmatmul.mubr.msk.f32.vlgmr.msra.gmra.mxu1 %vm196_vm3, %v468_v26 }
 0x5b6   :  { %2840 = vmatpush3.msra.mxu1 %v3523_v2  ;;  %2847 = vmatprep.mubr.msk.f32.mxu1 %vm3432_vm0, %v3431_v0 }
 0x5b7   :  { %2841 = vmatprep.subr.mxu1 %v3431_v0 }
 0x5b8   :  { %2842 = vmatpush3.msra.mxu1 %v3526_v4 }
 0x5b9   :  { %2843 = vmatprep.subr.mxu1 %v3431_v0 }
 0x5ba   :  { %2844 = vmatpush3.msra.mxu1 %v3530_v7 }
 0x5bb   :  { %2845 = vmatprep.subr.mxu1 %v3431_v0 }
 0x5bc   :  { %2846 = vmatpush3.msra.mxu1 %v3533_v8 }
 0x5bd   :  { %2861 = vmatprep.subr.mxu1 %v3431_v0 }
 0x675   :  { %v537_v27 = vpop.f32.mrf.mxu1 }
 0x676   :  { %v542_v28 = vrot.slane %v537_v27, 6  ;;  %v543_v29 = vrot.slane %v537_v27, 7 }
 0x677   :  { %v2827_v30 = vpop.f32.mrf.mxu1 }
 0x678   :  { %v546_v31 = vadd.f32 %v542_v28, %v3566_v15  ;;  %v547_v32 = vadd.f32 %v543_v29, %v3564_v11 }
 0x67a   :  { %3030 = vtanh.f32 %v546_v31  ;;  %v2655_v35 = vmul.f32 -1.442695, %v546_v31  ;;  %v2656_v36 = vmul.f32 -1.442695, %v547_v32 }
 0x67b   :  { %3032 = vtanh.f32 %v547_v32 }
 0x67c   :  { %3034 = vpow2.f32 %v2655_v35 }
 0x67d   :  { %3036 = vpow2.f32 %v2656_v36 }
 0x687   :  { %v3031_v33 = vpop.eup %3030 }
 0x688   :  { %v3033_v34 = vpop.eup %3032  ;;  %572 = vrot.lane.b32.xlu0 %v3031_v33, %s3433_s12 }
 0x689   :  { %574 = vrot.lane.b32.xlu1 %v3033_v34, %s3433_s12  ;;  %v3035_v37 = vpop.eup %3034 }
 0x68a   :  { %v3037_v38 = vpop.eup %3036  ;;  %v554_v39 = vadd.f32 1.0, %v3035_v37 }
 0x68b   :  { %v555_v40 = vadd.f32 1.0, %v3037_v38 }
 0x68c   :  { %3038 = vrcp.f32 %v554_v39 }
 0x68d   :  { %3040 = vrcp.f32 %v555_v40 }
 0x699   :  { %v3039_v41 = vpop.eup %3038 }
 0x69a   :  { %v3041_v44 = vpop.eup %3040  ;;  %v568_v51 = vmul.f32 %v3039_v41, %v564_v49 }
 0x69b   :  { %v569_v52 = vmul.f32 %v3041_v44, %v565_v50 }
 0x6fa   :  { %v573_v43 = vpop.permute.xlu0 %572 }
 0x6fb   :  { %v575_v46 = vpop.permute.xlu1 %574  ;;  %v578_v47 = vmul.f32 %v3039_v41, %v573_v43 }
 0x6fc   :  { %v579_v48 = vmul.f32 %v3041_v44, %v575_v46 }
 0x6fd   :  { %582 = vrot.lane.b32.xlu0 %v578_v47, %s3434_s3 }
 0x6fe   :  { %584 = vrot.lane.b32.xlu1 %v579_v48, %s3434_s3 }
 0x76f   :  { %v583_v53 = vpop.permute.xlu0 %582 }
 0x770   :  { %v585_v54 = vpop.permute.xlu1 %584  ;;  %v3628_v55 = vadd.f32 %v583_v53, %v568_v51 }
 0x771   :  { %v3630_v56 = vadd.f32 %v585_v54, %v569_v52 }
 0x772   :  { %3042 = vtanh.f32 %v3628_v55  ;;  %v704_v32 = vrot.slane %v3628_v55, 7 }
 0x773   :  { %3044 = vtanh.f32 %v3630_v56  ;;  %v705_v33 = vrot.slane %v3630_v56, 7 }
 0x77f   :  { %v3043_v57 = vpop.eup %3042 }
 0x780   :  { %v3045_v58 = vpop.eup %3044  ;;  %594 = vrot.lane.b32.xlu0 %v3043_v57, %s3433_s12 }
 0x781   :  { %596 = vrot.lane.b32.xlu1 %v3045_v58, %s3433_s12 }
 0x7f2   :  { %v595_v59 = vpop.permute.xlu0 %594 }
 0x7f3   :  { %v597_v60 = vpop.permute.xlu1 %596  ;;  %v600_v61 = vmul.f32 %v3039_v41, %v595_v59 }
 0x7f4   :  { %v601_v63 = vmul.f32 %v3041_v44, %v597_v60 }
 0x7f5   :  { %v604_v3 = vrot.slane %v600_v61, 2  ;;  %v3643_v5 = vsel %vm1305_vm5, %v1303_v62, %v600_v61 }
 0x7f6   :  { %v605_v6 = vrot.slane %v601_v63, 1  ;;  %v3646_v9 = vsel %vm1305_vm5, %v1304_v1, %v601_v63 }
 0x7f8   :  { %v606_v10 = vsel %vm327_vm2, %v605_v6, %v604_v3 }
 0x7f9   :  { %607 = vrot.lane.b32.xlu0 %v606_v10, %s3434_s3 }
 0x86b   :  { %v608_v12 = vpop.permute.xlu0 %607 }
 0x86c   :  { %2837 = vmatmul.mubr.msk.f32.vlgmr.msra.gmra.mxu0 %vm196_vm3, %v608_v12 }
 0x86d   :  { %2851 = vmatpush3.msra.mxu0 %v3523_v2  ;;  %2858 = vmatprep.mubr.msk.f32.mxu0 %vm3432_vm0, %v3431_v0 }
 0x86e   :  { %2852 = vmatprep.subr.mxu0 %v3431_v0 }
 0x86f   :  { %2853 = vmatpush3.msra.mxu0 %v3526_v4 }
 0x870   :  { %2854 = vmatprep.subr.mxu0 %v3431_v0 }
 0x871   :  { %2855 = vmatpush3.msra.mxu0 %v3530_v7 }
 0x872   :  { %2856 = vmatprep.subr.mxu0 %v3431_v0 }
 0x873   :  { %2857 = vmatpush3.msra.mxu0 %v3533_v8 }
 0x874   :  { %2872 = vmatprep.subr.mxu0 %v3431_v0 }
 0x92c   :  { %v677_v42 = vpop.f32.mrf.mxu0 }
 0x92d   :  { %v682_v45 = vrot.slane %v677_v42, 5  ;;  %v683_v13 = vrot.slane %v677_v42, 6 }
 0x92e   :  { %v2838_v14 = vpop.f32.mrf.mxu0 }
 0x92f   :  { %v686_v16 = vadd.f32 %v682_v45, %v3566_v15  ;;  %v687_v17 = vadd.f32 %v683_v13, %v3564_v11 }
 0x931   :  { %3046 = vtanh.f32 %v686_v16  ;;  %v2658_v20 = vmul.f32 -1.442695, %v686_v16  ;;  %v2659_v21 = vmul.f32 -1.442695, %v687_v17 }
 0x932   :  { %3048 = vtanh.f32 %v687_v17 }
 0x933   :  { %3050 = vpow2.f32 %v2658_v20 }
 0x934   :  { %3052 = vpow2.f32 %v2659_v21 }
 0x93e   :  { %v3047_v18 = vpop.eup %3046 }
 0x93f   :  { %v3049_v19 = vpop.eup %3048  ;;  %712 = vrot.lane.b32.xlu1 %v3047_v18, %s3433_s12 }
 0x940   :  { %714 = vrot.lane.b32.xlu0 %v3049_v19, %s3433_s12  ;;  %v3051_v22 = vpop.eup %3050 }
 0x941   :  { %v3053_v23 = vpop.eup %3052  ;;  %v694_v24 = vadd.f32 1.0, %v3051_v22 }
 0x942   :  { %v695_v25 = vadd.f32 1.0, %v3053_v23 }
 0x943   :  { %3054 = vrcp.f32 %v694_v24 }
 0x944   :  { %3056 = vrcp.f32 %v695_v25 }
 0x950   :  { %v3055_v26 = vpop.eup %3054 }
 0x951   :  { %v3057_v28 = vpop.eup %3056  ;;  %v708_v34 = vmul.f32 %v3055_v26, %v704_v32 }
 0x952   :  { %v709_v35 = vmul.f32 %v3057_v28, %v705_v33 }
 0x9b1   :  { %v713_v27 = vpop.permute.xlu1 %712 }
 0x9b2   :  { %v715_v29 = vpop.permute.xlu0 %714  ;;  %v718_v30 = vmul.f32 %v3055_v26, %v713_v27 }
 0x9b3   :  { %v719_v31 = vmul.f32 %v3057_v28, %v715_v29 }
 0x9b4   :  { %722 = vrot.lane.b32.xlu1 %v718_v30, %s3434_s3 }
 0x9b5   :  { %724 = vrot.lane.b32.xlu0 %v719_v31, %s3434_s3 }
 0xa26   :  { %v723_v36 = vpop.permute.xlu1 %722 }
 0xa27   :  { %v725_v37 = vpop.permute.xlu0 %724  ;;  %v728_v38 = vadd.f32 %v723_v36, %v708_v34 }
 0xa28   :  { %v729_v39 = vadd.f32 %v725_v37, %v709_v35 }
 0xa29   :  { %3058 = vtanh.f32 %v728_v38  ;;  %v844_v14 = vrot.slane %v728_v38, 7 }
 0xa2a   :  { %3060 = vtanh.f32 %v729_v39  ;;  %v845_v16 = vrot.slane %v729_v39, 7 }
 0xa36   :  { %v3059_v40 = vpop.eup %3058 }
 0xa37   :  { %v3061_v41 = vpop.eup %3060  ;;  %734 = vrot.lane.b32.xlu1 %v3059_v40, %s3433_s12 }
 0xa38   :  { %736 = vrot.lane.b32.xlu0 %v3061_v41, %s3433_s12 }
 0xaa9   :  { %v735_v43 = vpop.permute.xlu1 %734 }
 0xaaa   :  { %v737_v44 = vpop.permute.xlu0 %736  ;;  %v740_v46 = vmul.f32 %v3055_v26, %v735_v43 }
 0xaab   :  { %v741_v47 = vmul.f32 %v3057_v28, %v737_v44 }
 0xaac   :  { %v744_v48 = vrot.slane %v740_v46, 3  ;;  %v3673_v49 = vsel %vm1308_vm6, %v3643_v5, %v740_v46 }
 0xaad   :  { %v745_v50 = vrot.slane %v741_v47, 2  ;;  %v3677_v51 = vsel %vm1308_vm6, %v3646_v9, %v741_v47 }
 0xaaf   :  { %v746_v52 = vsel %vm327_vm2, %v745_v50, %v744_v48 }
 0xab0   :  { %747 = vrot.lane.b32.xlu1 %v746_v52, %s3434_s3 }
 0xb22   :  { %v748_v53 = vpop.permute.xlu1 %747 }
 0xb23   :  { %2848 = vmatmul.mubr.msk.f32.vlgmr.msra.gmra.mxu1 %vm196_vm3, %v748_v53 }
 0xb24   :  { %2862 = vmatpush3.msra.mxu1 %v3523_v2  ;;  %2869 = vmatprep.mubr.msk.f32.mxu1 %vm3432_vm0, %v3431_v0 }
 0xb25   :  { %2863 = vmatprep.subr.mxu1 %v3431_v0 }
 0xb26   :  { %2864 = vmatpush3.msra.mxu1 %v3526_v4 }
 0xb27   :  { %2865 = vmatprep.subr.mxu1 %v3431_v0 }
 0xb28   :  { %2866 = vmatpush3.msra.mxu1 %v3530_v7 }
 0xb29   :  { %2867 = vmatprep.subr.mxu1 %v3431_v0 }
 0xb2a   :  { %2868 = vmatpush3.msra.mxu1 %v3533_v8 }
 0xbe3   :  { %v817_v54 = vpop.f32.mrf.mxu1 }
 0xbe4   :  { %v822_v55 = vrot.slane %v817_v54, 4  ;;  %v823_v56 = vrot.slane %v817_v54, 5 }
 0xbe5   :  { %v2849_v57 = vpop.f32.mrf.mxu1 }
 0xbe6   :  { %v826_v58 = vadd.f32 %v822_v55, %v3566_v15  ;;  %v827_v59 = vadd.f32 %v823_v56, %v3564_v11 }
 0xbe8   :  { %3062 = vtanh.f32 %v826_v58  ;;  %v2661_v62 = vmul.f32 -1.442695, %v826_v58  ;;  %v2662_v63 = vmul.f32 -1.442695, %v827_v59 }
 0xbe9   :  { %3064 = vtanh.f32 %v827_v59 }
 0xbea   :  { %3066 = vpow2.f32 %v2661_v62 }
 0xbeb   :  { %3068 = vpow2.f32 %v2662_v63 }
 0xbf5   :  { %v3063_v60 = vpop.eup %3062 }
 0xbf6   :  { %v3065_v61 = vpop.eup %3064  ;;  %852 = vrot.lane.b32.xlu0 %v3063_v60, %s3433_s12 }
 0xbf7   :  { %854 = vrot.lane.b32.xlu1 %v3065_v61, %s3433_s12  ;;  %v3067_v1 = vpop.eup %3066 }
 0xbf8   :  { %v3069_v3 = vpop.eup %3068  ;;  %v834_v5 = vadd.f32 1.0, %v3067_v1 }
 0xbf9   :  { %v835_v6 = vadd.f32 1.0, %v3069_v3 }
 0xbfa   :  { %3070 = vrcp.f32 %v834_v5 }
 0xbfb   :  { %3072 = vrcp.f32 %v835_v6 }
 0xc07   :  { %v3071_v9 = vpop.eup %3070 }
 0xc08   :  { %v3073_v12 = vpop.eup %3072  ;;  %v848_v17 = vmul.f32 %v3071_v9, %v844_v14 }
 0xc09   :  { %v849_v18 = vmul.f32 %v3073_v12, %v845_v16 }
 0xc68   :  { %v853_v10 = vpop.permute.xlu0 %852 }
 0xc69   :  { %v855_v42 = vpop.permute.xlu1 %854  ;;  %v858_v45 = vmul.f32 %v3071_v9, %v853_v10 }
 0xc6a   :  { %v859_v13 = vmul.f32 %v3073_v12, %v855_v42 }
 0xc6b   :  { %862 = vrot.lane.b32.xlu0 %v858_v45, %s3434_s3 }
 0xc6c   :  { %864 = vrot.lane.b32.xlu1 %v859_v13, %s3434_s3 }
 0xcdd   :  { %v863_v19 = vpop.permute.xlu0 %862 }
 0xcde   :  { %v865_v20 = vpop.permute.xlu1 %864  ;;  %v3697_v21 = vadd.f32 %v863_v19, %v848_v17 }
 0xcdf   :  { %v3699_v22 = vadd.f32 %v865_v20, %v849_v18 }
 0xce0   :  { %3074 = vtanh.f32 %v3697_v21  ;;  %v984_v53 = vrot.slane %v3697_v21, 7 }
 0xce1   :  { %3076 = vtanh.f32 %v3699_v22  ;;  %v985_v54 = vrot.slane %v3699_v22, 7 }
 0xced   :  { %v3075_v23 = vpop.eup %3074 }
 0xcee   :  { %v3077_v24 = vpop.eup %3076  ;;  %874 = vrot.lane.b32.xlu0 %v3075_v23, %s3433_s12 }
 0xcef   :  { %876 = vrot.lane.b32.xlu1 %v3077_v24, %s3433_s12 }
 0xd60   :  { %v875_v25 = vpop.permute.xlu0 %874 }
 0xd61   :  { %v877_v26 = vpop.permute.xlu1 %876  ;;  %v880_v27 = vmul.f32 %v3071_v9, %v875_v25 }
 0xd62   :  { %v881_v28 = vmul.f32 %v3073_v12, %v877_v26 }
 0xd63   :  { %v884_v29 = vrot.slane %v880_v27, 4  ;;  %v3707_v30 = vsel %vm1311_vm7, %v3673_v49, %v880_v27 }
 0xd64   :  { %v885_v31 = vrot.slane %v881_v28, 3  ;;  %v3711_v32 = vsel %vm1311_vm7, %v3677_v51, %v881_v28 }
 0xd66   :  { %v886_v33 = vsel %vm327_vm2, %v885_v31, %v884_v29 }
 0xd67   :  { %887 = vrot.lane.b32.xlu0 %v886_v33, %s3434_s3 }
 0xdd9   :  { %v888_v34 = vpop.permute.xlu0 %887 }
 0xdda   :  { %2859 = vmatmul.mubr.msk.f32.vlgmr.msra.gmra.mxu0 %vm196_vm3, %v888_v34 }
 0xddb   :  { %2873 = vmatpush3.msra.mxu0 %v3523_v2  ;;  %2880 = vmatprep.mubr.msk.f32.mxu0 %vm3432_vm0, %v3431_v0 }
 0xddc   :  { %2874 = vmatprep.subr.mxu0 %v3431_v0 }
 0xddd   :  { %2875 = vmatpush3.msra.mxu0 %v3526_v4 }
 0xdde   :  { %2876 = vmatprep.subr.mxu0 %v3431_v0 }
 0xddf   :  { %2877 = vmatpush3.msra.mxu0 %v3530_v7 }
 0xde0   :  { %2878 = vmatprep.subr.mxu0 %v3431_v0 }
 0xde1   :  { %2879 = vmatpush3.msra.mxu0 %v3533_v8 }
 0xde2   :  { %2894 = vmatprep.subr.mxu0 %v3431_v0 }
 0xe9a   :  { %v957_v35 = vpop.f32.mrf.mxu0 }
 0xe9b   :  { %v962_v36 = vrot.slane %v957_v35, 3  ;;  %v963_v2 = vrot.slane %v957_v35, 4 }
 0xe9c   :  { %v2860_v37 = vpop.f32.mrf.mxu0 }
 0xe9d   :  { %v966_v38 = vadd.f32 %v962_v36, %v3566_v15  ;;  %v967_v39 = vadd.f32 %v963_v2, %v3564_v11 }
 0xe9f   :  { %3078 = vtanh.f32 %v966_v38  ;;  %v2664_v7 = vmul.f32 -1.442695, %v966_v38  ;;  %v2665_v8 = vmul.f32 -1.442695, %v967_v39 }
 0xea0   :  { %3080 = vtanh.f32 %v967_v39 }
 0xea1   :  { %3082 = vpow2.f32 %v2664_v7 }
 0xea2   :  { %3084 = vpow2.f32 %v2665_v8 }
 0xeac   :  { %v3079_v4 = vpop.eup %3078 }
 0xead   :  { %v3081_v40 = vpop.eup %3080  ;;  %992 = vrot.lane.b32.xlu1 %v3079_v4, %s3433_s12 }
 0xeae   :  { %994 = vrot.lane.b32.xlu0 %v3081_v40, %s3433_s12  ;;  %v3083_v41 = vpop.eup %3082 }
 0xeaf   :  { %v3085_v43 = vpop.eup %3084  ;;  %v974_v44 = vadd.f32 1.0, %v3083_v41 }
 0xeb0   :  { %v975_v46 = vadd.f32 1.0, %v3085_v43 }
 0xeb1   :  { %3086 = vrcp.f32 %v974_v44 }
 0xeb2   :  { %3088 = vrcp.f32 %v975_v46 }
 0xebe   :  { %v3087_v47 = vpop.eup %3086 }
 0xebf   :  { %v3089_v49 = vpop.eup %3088  ;;  %v988_v55 = vmul.f32 %v3087_v47, %v984_v53 }
 0xec0   :  { %v989_v56 = vmul.f32 %v3089_v49, %v985_v54 }
 0xf1f   :  { %v993_v48 = vpop.permute.xlu1 %992 }
 0xf20   :  { %v995_v50 = vpop.permute.xlu0 %994  ;;  %v998_v51 = vmul.f32 %v3087_v47, %v993_v48 }
 0xf21   :  { %v999_v52 = vmul.f32 %v3089_v49, %v995_v50 }
 0xf22   :  { %1002 = vrot.lane.b32.xlu1 %v998_v51, %s3434_s3 }
 0xf23   :  { %1004 = vrot.lane.b32.xlu0 %v999_v52, %s3434_s3 }
 0xf94   :  { %v1003_v57 = vpop.permute.xlu1 %1002 }
 0xf95   :  { %v1005_v58 = vpop.permute.xlu0 %1004  ;;  %v1008_v59 = vadd.f32 %v1003_v57, %v988_v55 }
 0xf96   :  { %v1009_v60 = vadd.f32 %v1005_v58, %v989_v56 }
 0xf97   :  { %3090 = vtanh.f32 %v1008_v59  ;;  %v1124_v34 = vrot.slane %v1008_v59, 7 }
 0xf98   :  { %3092 = vtanh.f32 %v1009_v60  ;;  %v1125_v35 = vrot.slane %v1009_v60, 7 }
 0xfa4   :  { %v3091_v61 = vpop.eup %3090 }
 0xfa5   :  { %v3093_v62 = vpop.eup %3092  ;;  %1014 = vrot.lane.b32.xlu1 %v3091_v61, %s3433_s12 }
 0xfa6   :  { %1016 = vrot.lane.b32.xlu0 %v3093_v62, %s3433_s12 }
0x1017   :  { %v1015_v63 = vpop.permute.xlu1 %1014 }
0x1018   :  { %v1017_v1 = vpop.permute.xlu0 %1016  ;;  %v1020_v3 = vmul.f32 %v3087_v47, %v1015_v63 }
0x1019   :  { %v1021_v5 = vmul.f32 %v3089_v49, %v1017_v1 }
0x101a   :  { %v1024_v6 = vrot.slane %v1020_v3, 5  ;;  %v1315_v9 = vsel %vm1314_vm8, %v3707_v30, %v1020_v3 }
0x101b   :  { %v1025_v10 = vrot.slane %v1021_v5, 4  ;;  %v1316_v12 = vsel %vm1314_vm8, %v3711_v32, %v1021_v5 }
0x101d   :  { %v1026_v42 = vsel %vm327_vm2, %v1025_v10, %v1024_v6 }
0x101e   :  { %1027 = vrot.lane.b32.xlu1 %v1026_v42, %s3434_s3 }
0x1090   :  { %v1028_v45 = vpop.permute.xlu1 %1027 }
0x1091   :  { %2870 = vmatmul.mubr.msk.f32.vlgmr.msra.gmra.mxu1 %vm196_vm3, %v1028_v45 }
0x1151   :  { %v1097_v13 = vpop.f32.mrf.mxu1 }
0x1152   :  { %v1102_v14 = vrot.slane %v1097_v13, 2  ;;  %v1103_v16 = vrot.slane %v1097_v13, 3 }
0x1153   :  { %v2871_v17 = vpop.f32.mrf.mxu1 }
0x1154   :  { %v1106_v18 = vadd.f32 %v1102_v14, %v3566_v15  ;;  %v1107_v19 = vadd.f32 %v1103_v16, %v3564_v11 }
0x1156   :  { %3094 = vtanh.f32 %v1106_v18  ;;  %v2667_v22 = vmul.f32 -1.442695, %v1106_v18  ;;  %v2668_v23 = vmul.f32 -1.442695, %v1107_v19 }
0x1157   :  { %3096 = vtanh.f32 %v1107_v19  ;;  %v3774_v19 = vld [vmem:[#allocation10 + $0x18] sm:$0xff] }
0x1158   :  { %3098 = vpow2.f32 %v2667_v22  ;;  %v1349_v22 = vld [vmem:[#allocation8 + $0x10] sm:$0xff] }
0x1159   :  { %3100 = vpow2.f32 %v2668_v23  ;;  %v3780_v23 = vld [vmem:[#allocation10 + $0x8] sm:$0xff] }
0x1163   :  { %v3095_v20 = vpop.eup %3094 }
0x1164   :  { %v3097_v21 = vpop.eup %3096  ;;  %1132 = vrot.lane.b32.xlu0 %v3095_v20, %s3433_s12  ;;  %v1350_v20 = vld [vmem:[#allocation8 + $0x18] sm:$0xff] }
0x1165   :  { %1134 = vrot.lane.b32.xlu1 %v3097_v21, %s3433_s12  ;;  %v3099_v24 = vpop.eup %3098  ;;  %v3776_v21 = vld [vmem:[#allocation10 + $0x10] sm:$0xff]  ;;  %2883 = vmatprep.subr.mxu1 %v1350_v20 }
0x1166   :  { %v3101_v25 = vpop.eup %3100  ;;  %v1114_v26 = vadd.f32 1.0, %v3099_v24  ;;  %2884 = vmatpush3.msra.mxu1 %v1350_v20  ;;  %v1348_v24 = vld [vmem:[#allocation8 + $0x8] sm:$0xff] }
0x1167   :  { %v1115_v27 = vadd.f32 1.0, %v3101_v25  ;;  %2885 = vmatprep.subr.mxu1 %v1349_v22  ;;  %v3784_v25 = vld [vmem:[#allocation10] sm:$0xff] }
0x1168   :  { %3102 = vrcp.f32 %v1114_v26  ;;  %2886 = vmatpush3.msra.mxu1 %v1349_v22  ;;  %v1347_v26 = vld [vmem:[#allocation8] sm:$0xff] }
0x1169   :  { %3104 = vrcp.f32 %v1115_v27  ;;  %2887 = vmatprep.subr.mxu1 %v1348_v24 }
0x116a   :  { %2888 = vmatpush3.msra.mxu1 %v1348_v24 }
0x116b   :  { %2889 = vmatprep.subr.mxu1 %v1347_v26 }
0x116c   :  { %2890 = vmatpush3.msra.mxu1 %v1347_v26 }
0x116d   :  { %2905 = vmatprep.subr.mxu1 %v3431_v0 }
0x1175   :  { %v3103_v28 = vpop.eup %3102 }
0x1176   :  { %v3105_v30 = vpop.eup %3104  ;;  %v1128_v36 = vmul.f32 %v3103_v28, %v1124_v34 }
0x1177   :  { %v1129_v2 = vmul.f32 %v3105_v30, %v1125_v35 }
0x11d6   :  { %v1133_v29 = vpop.permute.xlu0 %1132 }
0x11d7   :  { %v1135_v31 = vpop.permute.xlu1 %1134  ;;  %v1138_v32 = vmul.f32 %v3103_v28, %v1133_v29 }
0x11d8   :  { %v1139_v33 = vmul.f32 %v3105_v30, %v1135_v31 }
0x11d9   :  { %1142 = vrot.lane.b32.xlu0 %v1138_v32, %s3434_s3 }
0x11da   :  { %1144 = vrot.lane.b32.xlu1 %v1139_v33, %s3434_s3 }
0x124b   :  { %v1143_v37 = vpop.permute.xlu0 %1142 }
0x124c   :  { %v1145_v38 = vpop.permute.xlu1 %1144  ;;  %v1148_v39 = vadd.f32 %v1143_v37, %v1128_v36 }
0x124d   :  { %v1149_v4 = vadd.f32 %v1145_v38, %v1129_v2  ;;  %v2672_v38 = vld [vmem:[%s4079_s6] ss:$0 sm:$0xff]  ;;  %s3435_s6 = smov 96  }
0x124e   :  { %3106 = vtanh.f32 %v1148_v39 }
0x124f   :  { %3108 = vtanh.f32 %v1149_v4  ;;  %v1265_v42 = vrot.slane %v1149_v4, 7 }
0x125b   :  { %v3107_v40 = vpop.eup %3106 }
0x125c   :  { %v3109_v7 = vpop.eup %3108  ;;  %1154 = vrot.lane.b32.xlu0 %v3107_v40, %s3433_s12 }
0x125d   :  { %1156 = vrot.lane.b32.xlu1 %v3109_v7, %s3433_s12 }
0x12ce   :  { %v1155_v8 = vpop.permute.xlu0 %1154 }
0x12cf   :  { %v1157_v41 = vpop.permute.xlu1 %1156  ;;  %v1160_v43 = vmul.f32 %v3103_v28, %v1155_v8 }
0x12d0   :  { %v1161_v44 = vmul.f32 %v3105_v30, %v1157_v41 }
0x12d1   :  { %v1164_v46 = vrot.slane %v1160_v43, 6  ;;  %v3752_v47 = vsel %vm1317_vm9, %v1315_v9, %v1160_v43 }
0x12d2   :  { %v1165_v48 = vrot.slane %v1161_v44, 5  ;;  %v3755_v49 = vsel %vm1317_vm9, %v1316_v12, %v1161_v44  ;;  %v1264_v12 = vrot.slane %v1148_v39, 7 }
0x12d4   :  { %v1166_v50 = vsel %vm327_vm2, %v1165_v48, %v1164_v46 }
0x12d5   :  { %1167 = vrot.lane.b32.xlu0 %v1166_v50, %s3434_s3 }
0x1347   :  { %v1168_v51 = vpop.permute.xlu0 %1167 }
0x1348   :  { %2881 = vmatmul.mubr.msk.f32.vlgmr.msra.gmra.mxu0 %vm196_vm3, %v1168_v51 }
0x1349   :  { %2902 = vmatprep.mubr.msk.f32.mxu0 %vm3432_vm0, %v3431_v0  ;;  %2895 = vmatpush3.msra.mxu0 %v3774_v19 }
0x134a   :  { %2896 = vmatprep.subr.mxu0 %v3431_v0 }
0x134b   :  { %2897 = vmatpush3.msra.mxu0 %v3776_v21 }
0x134c   :  { %2898 = vmatprep.subr.mxu0 %v3431_v0 }
0x134d   :  { %2899 = vmatpush3.msra.mxu0 %v3780_v23 }
0x134e   :  { %2900 = vmatprep.subr.mxu0 %v3431_v0 }
0x134f   :  { %2901 = vmatpush3.msra.mxu0 %v3784_v25 }
0x1350   :  { %2903 = vmatmul.mubr.f32.vlgmr.msra.gmra.mxu0 %v3431_v0  ;;  %2916 = vmatprep.subr.mxu0 %v3431_v0 }
0x1351   :  { %2917 = vmatpush3.msra.mxu0 %v3774_v19  ;;  %2924 = vmatprep.mubr.msk.f32.mxu0 %vm3432_vm0, %v3431_v0 }
0x1352   :  { %2918 = vmatprep.subr.mxu0 %v3431_v0 }
0x1353   :  { %2919 = vmatpush3.msra.mxu0 %v3776_v21 }
0x1354   :  { %2920 = vmatprep.subr.mxu0 %v3431_v0 }
0x1355   :  { %2921 = vmatpush3.msra.mxu0 %v3780_v23 }
0x1356   :  { %2922 = vmatprep.subr.mxu0 %v3431_v0 }
0x1357   :  { %2923 = vmatpush3.msra.mxu0 %v3784_v25 }
0x1358   :  { %2938 = vmatprep.subr.mxu0 %v3431_v0 }
0x1408   :  { %v1237_v52 = vpop.f32.mrf.mxu0 }
0x1409   :  { %v1242_v53 = vrot.slane %v1237_v52, 1  ;;  %v1243_v54 = vrot.slane %v1237_v52, 2 }
0x140a   :  { %v2882_v55 = vpop.f32.mrf.mxu0 }
0x140b   :  { %v1246_v56 = vadd.f32 %v1242_v53, %v3566_v15  ;;  %v1247_v57 = vadd.f32 %v1243_v54, %v3564_v11 }
0x140d   :  { %3110 = vtanh.f32 %v1246_v56  ;;  %v2670_v60 = vmul.f32 -1.442695, %v1246_v56  ;;  %v2671_v61 = vmul.f32 -1.442695, %v1247_v57 }
0x140e   :  { %3112 = vtanh.f32 %v1247_v57 }
0x140f   :  { %3114 = vpow2.f32 %v2670_v60 }
0x1410   :  { %3116 = vpow2.f32 %v2671_v61  ;;  %v1513_v35 = vpop.f32.mrf.mxu0 }
0x1411   :  { %v1518_v39 = vrot.slane %v1513_v35, 1 }
0x1412   :  { %v2904_v36 = vpop.f32.mrf.mxu0 }
0x141a   :  { %v3111_v58 = vpop.eup %3110 }
0x141b   :  { %v3113_v59 = vpop.eup %3112  ;;  %1272 = vrot.lane.b32.xlu1 %v3111_v58, %s3433_s12 }
0x141c   :  { %1274 = vrot.lane.b32.xlu0 %v3113_v59, %s3433_s12  ;;  %v3115_v62 = vpop.eup %3114 }
0x141d   :  { %v3117_v63 = vpop.eup %3116  ;;  %v1254_v1 = vadd.f32 1.0, %v3115_v62 }
0x141e   :  { %v1255_v3 = vadd.f32 1.0, %v3117_v63 }
0x141f   :  { %3118 = vrcp.f32 %v1254_v1 }
0x1420   :  { %3120 = vrcp.f32 %v1255_v3 }
0x142c   :  { %v3119_v15 = vpop.eup %3118 }
0x142d   :  { %v3121_v5 = vpop.eup %3120  ;;  %v1268_v45 = vmul.f32 %v3119_v15, %v1264_v12 }
0x142e   :  { %v1269_v13 = vmul.f32 %v3121_v5, %v1265_v42 }
0x148d   :  { %v1273_v11 = vpop.permute.xlu1 %1272 }
0x148e   :  { %v1275_v6 = vpop.permute.xlu0 %1274  ;;  %v1278_v9 = vmul.f32 %v3119_v15, %v1273_v11 }
0x148f   :  { %v1279_v10 = vmul.f32 %v3121_v5, %v1275_v6 }
0x1490   :  { %1282 = vrot.lane.b32.xlu1 %v1278_v9, %s3434_s3 }
0x1491   :  { %1284 = vrot.lane.b32.xlu0 %v1279_v10, %s3434_s3 }
0x1502   :  { %v1283_v14 = vpop.permute.xlu1 %1282 }
0x1503   :  { %v1285_v16 = vpop.permute.xlu0 %1284  ;;  %v3768_v17 = vadd.f32 %v1283_v14, %v1268_v45 }
0x1504   :  { %v3770_v18 = vadd.f32 %v1285_v16, %v1269_v13 }
0x1505   :  { %3122 = vtanh.f32 %v3768_v17 }
0x1506   :  { %3124 = vtanh.f32 %v3770_v18 }
0x1512   :  { %v3123_v27 = vpop.eup %3122 }
0x1513   :  { %v3125_v28 = vpop.eup %3124  ;;  %1294 = vrot.lane.b32.xlu1 %v3123_v27, %s3433_s12 }
0x1514   :  { %1296 = vrot.lane.b32.xlu0 %v3125_v28, %s3433_s12 }
0x1585   :  { %v1295_v29 = vpop.permute.xlu1 %1294 }
0x1586   :  { %v1297_v30 = vpop.permute.xlu0 %1296  ;;  %v3804_v31 = vmul.f32 %v3119_v15, %v1295_v29 }
0x1587   :  { %v3806_v32 = vmul.f32 %v3121_v5, %v1297_v30 }
0x1588   :  { %v1321_v33 = vsel %vm1320_vm10, %v3752_v47, %v3804_v31 }
0x1589   :  { %v1322_v34 = vsel %vm1320_vm10, %v3755_v49, %v3806_v32  ;;  %1364 = vrot.lane.b32.xlu1 %v1321_v33, %s3434_s3 }
0x158a   :  { %1366 = vrot.lane.b32.xlu0 %v1322_v34, %s3434_s3 }
0x15fb   :  { %v1365_v2 = vpop.permute.xlu1 %1364 }
0x15fc   :  { %v1367_v37 = vpop.permute.xlu0 %1366  ;;  %2891 = vmatprep.mubr.msk.f32.mxu1 %vm196_vm3, %v1365_v2 }
0x15fd   :  { %2892 = vmatmul.mubr.msk.f32.vlgmr.msra.gmra.mxu1 %vm196_vm3, %v1367_v37 }
0x15fe   :  { %2906 = vmatpush3.msra.mxu1 %v3774_v19  ;;  %2913 = vmatprep.mubr.msk.f32.mxu1 %vm3432_vm0, %v3431_v0 }
0x15ff   :  { %2907 = vmatprep.subr.mxu1 %v3431_v0 }
0x1600   :  { %2908 = vmatpush3.msra.mxu1 %v3776_v21 }
0x1601   :  { %2909 = vmatprep.subr.mxu1 %v3431_v0 }
0x1602   :  { %2910 = vmatpush3.msra.mxu1 %v3780_v23 }
0x1603   :  { %2911 = vmatprep.subr.mxu1 %v3431_v0 }
0x1604   :  { %2912 = vmatpush3.msra.mxu1 %v3784_v25 }
0x1605   :  { %2927 = vmatprep.subr.mxu1 %v3431_v0 }
0x16bd   :  { %v2893_v4 = vpop.f32.mrf.mxu1 }
0x16be   :  { %v3831_v40 = vadd.f32 %v2893_v4, %v2672_v38 }
0x16bf   :  { %v1438_v7 = vpop.f32.mrf.mxu1 }
0x16c0   :  { %v1522_v8 = vadd.f32 %v1518_v39, %v3831_v40  ;;  %v3834_v41 = vadd.f32 %v2672_v38, %v1438_v7 }
0x16c2   :  { %v1521_v43 = vadd.f32 %v1513_v35, %v3834_v41  ;;  %3126 = vtanh.f32 %v1522_v8  ;;  %v2676_v47 = vmul.f32 -1.442695, %v1522_v8 }
0x16c4   :  { %3128 = vtanh.f32 %v1521_v43  ;;  %v2675_v48 = vmul.f32 -1.442695, %v1521_v43 }
0x16c5   :  { %3130 = vpow2.f32 %v2676_v47 }
0x16c6   :  { %3132 = vpow2.f32 %v2675_v48 }
0x16cf   :  { %v3127_v44 = vpop.eup %3126 }
0x16d0   :  { %1543 = vrot.lane.b32.xlu1 %v3127_v44, %s3433_s12 }
0x16d1   :  { %v3129_v46 = vpop.eup %3128 }
0x16d2   :  { %1541 = vrot.lane.b32.xlu0 %v3129_v46, %s3433_s12  ;;  %v3131_v49 = vpop.eup %3130 }
0x16d3   :  { %v3133_v50 = vpop.eup %3132  ;;  %v1530_v51 = vadd.f32 1.0, %v3131_v49 }
0x16d4   :  { %v1529_v52 = vadd.f32 1.0, %v3133_v50 }
0x16d5   :  { %3134 = vrcp.f32 %v1530_v51 }
0x16d6   :  { %3136 = vrcp.f32 %v1529_v52 }
0x16e2   :  { %v3135_v53 = vpop.eup %3134 }
0x16e3   :  { %v3137_v56 = vpop.eup %3136  ;;  %v1538_v59 = vmul.f32 0.0, %v3135_v53 }
0x16e4   :  { %v1537_v62 = vmul.f32 0.0, %v3137_v56 }
0x1742   :  { %v1544_v54 = vpop.permute.xlu1 %1543 }
0x1743   :  { %v1548_v55 = vmul.f32 %v3135_v53, %v1544_v54 }
0x1744   :  { %v1542_v57 = vpop.permute.xlu0 %1541 }
0x1745   :  { %1553 = vrot.lane.b32.xlu1 %v1548_v55, %s3434_s3  ;;  %v1547_v58 = vmul.f32 %v3137_v56, %v1542_v57 }
0x1747   :  { %1551 = vrot.lane.b32.xlu0 %v1547_v58, %s3434_s3 }
0x17b7   :  { %v1554_v60 = vpop.permute.xlu1 %1553 }
0x17b8   :  { %v1558_v61 = vadd.f32 %v1554_v60, %v1538_v59 }
0x17b9   :  { %v1552_v63 = vpop.permute.xlu0 %1551 }
0x17ba   :  { %3138 = vtanh.f32 %v1558_v61  ;;  %v1557_v1 = vadd.f32 %v1552_v63, %v1537_v62  ;;  %v1672_v39 = vrot.slane %v1558_v61, 7 }
0x17bc   :  { %3140 = vtanh.f32 %v1557_v1  ;;  %v1671_v7 = vrot.slane %v1557_v1, 7 }
0x17c7   :  { %v3139_v3 = vpop.eup %3138 }
0x17c8   :  { %1565 = vrot.lane.b32.xlu1 %v3139_v3, %s3433_s12 }
0x17c9   :  { %v3141_v15 = vpop.eup %3140 }
0x17ca   :  { %1563 = vrot.lane.b32.xlu0 %v3141_v15, %s3433_s12 }
0x183a   :  { %v1566_v11 = vpop.permute.xlu1 %1565 }
0x183b   :  { %v3843_v5 = vmul.f32 %v3135_v53, %v1566_v11 }
0x183c   :  { %v1564_v9 = vpop.permute.xlu0 %1563 }
0x183d   :  { %v1573_v6 = vrot.slane %v3843_v5, 7  ;;  %v3846_v10 = vmul.f32 %v3137_v56, %v1564_v9 }
0x183f   :  { %v1574_v12 = vsel %vm327_vm2, %v1573_v6, %v3846_v10 }
0x1840   :  { %1575 = vrot.lane.b32.xlu1 %v1574_v12, %s3434_s3 }
0x18b2   :  { %v1576_v42 = vpop.permute.xlu1 %1575 }
0x18b3   :  { %2914 = vmatmul.mubr.msk.f32.vlgmr.msra.gmra.mxu1 %vm196_vm3, %v1576_v42 }
0x18b4   :  { %2928 = vmatpush3.msra.mxu1 %v3774_v19  ;;  %2935 = vmatprep.mubr.msk.f32.mxu1 %vm3432_vm0, %v3431_v0 }
0x18b5   :  { %2929 = vmatprep.subr.mxu1 %v3431_v0 }
0x18b6   :  { %2930 = vmatpush3.msra.mxu1 %v3776_v21 }
0x18b7   :  { %2931 = vmatprep.subr.mxu1 %v3431_v0 }
0x18b8   :  { %2932 = vmatpush3.msra.mxu1 %v3780_v23 }
0x18b9   :  { %2933 = vmatprep.subr.mxu1 %v3431_v0 }
0x18ba   :  { %2934 = vmatpush3.msra.mxu1 %v3784_v25 }
0x18bb   :  { %2949 = vmatprep.subr.mxu1 %v3431_v0 }
0x1973   :  { %v1645_v45 = vpop.f32.mrf.mxu1 }
0x1974   :  { %v1650_v13 = vrot.slane %v1645_v45, 7  ;;  %v1654_v14 = vadd.f32 %v1645_v45, %v3831_v40 }
0x1975   :  { %v2915_v16 = vpop.f32.mrf.mxu1 }
0x1976   :  { %v1653_v20 = vadd.f32 %v1650_v13, %v3834_v41  ;;  %3142 = vtanh.f32 %v1654_v14  ;;  %v2679_v26 = vmul.f32 -1.442695, %v1654_v14 }
0x1978   :  { %3144 = vtanh.f32 %v1653_v20  ;;  %v2678_v27 = vmul.f32 -1.442695, %v1653_v20 }
0x1979   :  { %3146 = vpow2.f32 %v2679_v26 }
0x197a   :  { %3148 = vpow2.f32 %v2678_v27 }
0x1983   :  { %v3143_v22 = vpop.eup %3142 }
0x1984   :  { %1681 = vrot.lane.b32.xlu1 %v3143_v22, %s3433_s12 }
0x1985   :  { %v3145_v24 = vpop.eup %3144 }
0x1986   :  { %1679 = vrot.lane.b32.xlu0 %v3145_v24, %s3433_s12  ;;  %v3147_v28 = vpop.eup %3146 }
0x1987   :  { %v3149_v29 = vpop.eup %3148  ;;  %v1662_v30 = vadd.f32 1.0, %v3147_v28 }
0x1988   :  { %v1661_v33 = vadd.f32 1.0, %v3149_v29 }
0x1989   :  { %3150 = vrcp.f32 %v1662_v30 }
0x198a   :  { %3152 = vrcp.f32 %v1661_v33 }
0x1996   :  { %v3151_v34 = vpop.eup %3150 }
0x1997   :  { %v3153_v2 = vpop.eup %3152  ;;  %v1676_v4 = vmul.f32 %v3151_v34, %v1672_v39 }
0x1998   :  { %v1675_v44 = vmul.f32 %v3153_v2, %v1671_v7 }
0x19f6   :  { %v1682_v35 = vpop.permute.xlu1 %1681 }
0x19f7   :  { %v1686_v36 = vmul.f32 %v3151_v34, %v1682_v35 }
0x19f8   :  { %v1680_v37 = vpop.permute.xlu0 %1679 }
0x19f9   :  { %1691 = vrot.lane.b32.xlu1 %v1686_v36, %s3434_s3  ;;  %v1685_v38 = vmul.f32 %v3153_v2, %v1680_v37 }
0x19fb   :  { %1689 = vrot.lane.b32.xlu0 %v1685_v38, %s3434_s3 }
0x1a6b   :  { %v1692_v8 = vpop.permute.xlu1 %1691 }
0x1a6c   :  { %v1696_v43 = vadd.f32 %v1692_v8, %v1676_v4 }
0x1a6d   :  { %v1690_v46 = vpop.permute.xlu0 %1689 }
0x1a6e   :  { %3154 = vtanh.f32 %v1696_v43  ;;  %v1695_v47 = vadd.f32 %v1690_v46, %v1675_v44  ;;  %v1811_v24 = vrot.slane %v1696_v43, 7 }
0x1a70   :  { %3156 = vtanh.f32 %v1695_v47  ;;  %v1810_v22 = vrot.slane %v1695_v47, 7 }
0x1a7b   :  { %v3155_v48 = vpop.eup %3154 }
0x1a7c   :  { %1703 = vrot.lane.b32.xlu1 %v3155_v48, %s3433_s12 }
0x1a7d   :  { %v3157_v49 = vpop.eup %3156 }
0x1a7e   :  { %1701 = vrot.lane.b32.xlu0 %v3157_v49, %s3433_s12 }
0x1aee   :  { %v1704_v50 = vpop.permute.xlu1 %1703 }
0x1aef   :  { %v3872_v53 = vmul.f32 %v3151_v34, %v1704_v50 }
0x1af0   :  { %v1702_v51 = vpop.permute.xlu0 %1701 }
0x1af1   :  { %v3870_v52 = vmul.f32 %v3153_v2, %v1702_v51  ;;  %v2549_v4 = vsel %vm1302_vm4, %v3843_v5, %v3872_v53 }
0x1af3   :  { %v1711_v54 = vrot.slane %v3870_v52, 1  ;;  %v2548_v38 = vsel %vm1302_vm4, %v3846_v10, %v3870_v52 }
0x1af5   :  { %v1712_v55 = vsel %vm327_vm2, %v3872_v53, %v1711_v54 }
0x1af6   :  { %1713 = vrot.lane.b32.xlu0 %v1712_v55, %s3434_s3 }
0x1b68   :  { %v1714_v56 = vpop.permute.xlu0 %1713 }
0x1b69   :  { %2925 = vmatmul.mubr.msk.f32.vlgmr.msra.gmra.mxu0 %vm196_vm3, %v1714_v56 }
0x1b6a   :  { %2939 = vmatpush3.msra.mxu0 %v3774_v19  ;;  %2946 = vmatprep.mubr.msk.f32.mxu0 %vm3432_vm0, %v3431_v0 }
0x1b6b   :  { %2940 = vmatprep.subr.mxu0 %v3431_v0 }
0x1b6c   :  { %2941 = vmatpush3.msra.mxu0 %v3776_v21 }
0x1b6d   :  { %2942 = vmatprep.subr.mxu0 %v3431_v0 }
0x1b6e   :  { %2943 = vmatpush3.msra.mxu0 %v3780_v23 }
0x1b6f   :  { %2944 = vmatprep.subr.mxu0 %v3431_v0 }
0x1b70   :  { %2945 = vmatpush3.msra.mxu0 %v3784_v25 }
0x1b71   :  { %2960 = vmatprep.subr.mxu0 %v3431_v0 }
0x1c29   :  { %v1783_v57 = vpop.f32.mrf.mxu0 }
0x1c2a   :  { %v1788_v58 = vrot.slane %v1783_v57, 6  ;;  %v1789_v59 = vrot.slane %v1783_v57, 7 }
0x1c2b   :  { %v2926_v60 = vpop.f32.mrf.mxu0 }
0x1c2c   :  { %v1792_v61 = vadd.f32 %v1788_v58, %v3834_v41  ;;  %v1793_v62 = vadd.f32 %v1789_v59, %v3831_v40 }
0x1c2e   :  { %3158 = vtanh.f32 %v1792_v61  ;;  %v2681_v3 = vmul.f32 -1.442695, %v1792_v61  ;;  %v2682_v15 = vmul.f32 -1.442695, %v1793_v62 }
0x1c2f   :  { %3160 = vtanh.f32 %v1793_v62 }
0x1c30   :  { %3162 = vpow2.f32 %v2681_v3 }
0x1c31   :  { %3164 = vpow2.f32 %v2682_v15 }
0x1c3b   :  { %v3159_v63 = vpop.eup %3158 }
0x1c3c   :  { %v3161_v1 = vpop.eup %3160  ;;  %1818 = vrot.lane.b32.xlu1 %v3159_v63, %s3433_s12 }
0x1c3d   :  { %1820 = vrot.lane.b32.xlu0 %v3161_v1, %s3433_s12  ;;  %v3163_v11 = vpop.eup %3162 }
0x1c3e   :  { %v3165_v6 = vpop.eup %3164  ;;  %v1800_v9 = vadd.f32 1.0, %v3163_v11 }
0x1c3f   :  { %v1801_v12 = vadd.f32 1.0, %v3165_v6 }
0x1c40   :  { %3166 = vrcp.f32 %v1800_v9 }
0x1c41   :  { %3168 = vrcp.f32 %v1801_v12 }
0x1c4d   :  { %v3167_v42 = vpop.eup %3166 }
0x1c4e   :  { %v3169_v13 = vpop.eup %3168  ;;  %v1814_v26 = vmul.f32 %v3167_v42, %v1810_v22 }
0x1c4f   :  { %v1815_v27 = vmul.f32 %v3169_v13, %v1811_v24 }
0x1cae   :  { %v1819_v45 = vpop.permute.xlu1 %1818 }
0x1caf   :  { %v1821_v14 = vpop.permute.xlu0 %1820  ;;  %v1824_v16 = vmul.f32 %v3167_v42, %v1819_v45 }
0x1cb0   :  { %v1825_v20 = vmul.f32 %v3169_v13, %v1821_v14 }
0x1cb1   :  { %1828 = vrot.lane.b32.xlu1 %v1824_v16, %s3434_s3 }
0x1cb2   :  { %1830 = vrot.lane.b32.xlu0 %v1825_v20, %s3434_s3 }
0x1d23   :  { %v1829_v28 = vpop.permute.xlu1 %1828 }
0x1d24   :  { %v1831_v29 = vpop.permute.xlu0 %1830  ;;  %v3895_v30 = vadd.f32 %v1829_v28, %v1814_v26 }
0x1d25   :  { %v3897_v33 = vadd.f32 %v1831_v29, %v1815_v27 }
0x1d26   :  { %3170 = vtanh.f32 %v3895_v30  ;;  %v1950_v15 = vrot.slane %v3895_v30, 7 }
0x1d27   :  { %3172 = vtanh.f32 %v3897_v33  ;;  %v1951_v11 = vrot.slane %v3897_v33, 7 }
0x1d33   :  { %v3171_v34 = vpop.eup %3170 }
0x1d34   :  { %v3173_v35 = vpop.eup %3172  ;;  %1840 = vrot.lane.b32.xlu1 %v3171_v34, %s3433_s12 }
0x1d35   :  { %1842 = vrot.lane.b32.xlu0 %v3173_v35, %s3433_s12 }
0x1da6   :  { %v1841_v36 = vpop.permute.xlu1 %1840 }
0x1da7   :  { %v1843_v2 = vpop.permute.xlu0 %1842  ;;  %v1846_v37 = vmul.f32 %v3167_v42, %v1841_v36 }
0x1da8   :  { %v1847_v39 = vmul.f32 %v3169_v13, %v1843_v2 }
0x1da9   :  { %v1850_v7 = vrot.slane %v1846_v37, 2  ;;  %v3910_v8 = vsel %vm1305_vm5, %v2548_v38, %v1846_v37 }
0x1daa   :  { %v1851_v43 = vrot.slane %v1847_v39, 1  ;;  %v3913_v44 = vsel %vm1305_vm5, %v2549_v4, %v1847_v39 }
0x1dac   :  { %v1852_v46 = vsel %vm327_vm2, %v1851_v43, %v1850_v7 }
0x1dad   :  { %1853 = vrot.lane.b32.xlu1 %v1852_v46, %s3434_s3 }
0x1e1f   :  { %v1854_v47 = vpop.permute.xlu1 %1853 }
0x1e20   :  { %2936 = vmatmul.mubr.msk.f32.vlgmr.msra.gmra.mxu1 %vm196_vm3, %v1854_v47 }
0x1e21   :  { %2950 = vmatpush3.msra.mxu1 %v3774_v19  ;;  %2957 = vmatprep.mubr.msk.f32.mxu1 %vm3432_vm0, %v3431_v0 }
0x1e22   :  { %2951 = vmatprep.subr.mxu1 %v3431_v0 }
0x1e23   :  { %2952 = vmatpush3.msra.mxu1 %v3776_v21 }
0x1e24   :  { %2953 = vmatprep.subr.mxu1 %v3431_v0 }
0x1e25   :  { %2954 = vmatpush3.msra.mxu1 %v3780_v23 }
0x1e26   :  { %2955 = vmatprep.subr.mxu1 %v3431_v0 }
0x1e27   :  { %2956 = vmatpush3.msra.mxu1 %v3784_v25 }
0x1e28   :  { %2971 = vmatprep.subr.mxu1 %v3431_v0 }
0x1ee0   :  { %v1923_v5 = vpop.f32.mrf.mxu1 }
0x1ee1   :  { %v1928_v10 = vrot.slane %v1923_v5, 5  ;;  %v1929_v48 = vrot.slane %v1923_v5, 6 }
0x1ee2   :  { %v2937_v49 = vpop.f32.mrf.mxu1 }
0x1ee3   :  { %v1932_v50 = vadd.f32 %v1928_v10, %v3834_v41  ;;  %v1933_v51 = vadd.f32 %v1929_v48, %v3831_v40 }
0x1ee5   :  { %3174 = vtanh.f32 %v1932_v50  ;;  %v2684_v54 = vmul.f32 -1.442695, %v1932_v50  ;;  %v2685_v55 = vmul.f32 -1.442695, %v1933_v51 }
0x1ee6   :  { %3176 = vtanh.f32 %v1933_v51 }
0x1ee7   :  { %3178 = vpow2.f32 %v2684_v54 }
0x1ee8   :  { %3180 = vpow2.f32 %v2685_v55 }
0x1ef2   :  { %v3175_v52 = vpop.eup %3174 }
0x1ef3   :  { %v3177_v53 = vpop.eup %3176  ;;  %1958 = vrot.lane.b32.xlu0 %v3175_v52, %s3433_s12 }
0x1ef4   :  { %1960 = vrot.lane.b32.xlu1 %v3177_v53, %s3433_s12  ;;  %v3179_v56 = vpop.eup %3178 }
0x1ef5   :  { %v3181_v57 = vpop.eup %3180  ;;  %v1940_v58 = vadd.f32 1.0, %v3179_v56 }
0x1ef6   :  { %v1941_v59 = vadd.f32 1.0, %v3181_v57 }
0x1ef7   :  { %3182 = vrcp.f32 %v1940_v58 }
0x1ef8   :  { %3184 = vrcp.f32 %v1941_v59 }
0x1f04   :  { %v3183_v60 = vpop.eup %3182 }
0x1f05   :  { %v3185_v62 = vpop.eup %3184  ;;  %v1954_v6 = vmul.f32 %v3183_v60, %v1950_v15 }
0x1f06   :  { %v1955_v9 = vmul.f32 %v3185_v62, %v1951_v11 }
0x1f65   :  { %v1959_v61 = vpop.permute.xlu0 %1958 }
0x1f66   :  { %v1961_v63 = vpop.permute.xlu1 %1960  ;;  %v1964_v1 = vmul.f32 %v3183_v60, %v1959_v61 }
0x1f67   :  { %v1965_v3 = vmul.f32 %v3185_v62, %v1961_v63 }
0x1f68   :  { %1968 = vrot.lane.b32.xlu0 %v1964_v1, %s3434_s3 }
0x1f69   :  { %1970 = vrot.lane.b32.xlu1 %v1965_v3, %s3434_s3 }
0x1fda   :  { %v1969_v12 = vpop.permute.xlu0 %1968 }
0x1fdb   :  { %v1971_v42 = vpop.permute.xlu1 %1970  ;;  %v1974_v45 = vadd.f32 %v1969_v12, %v1954_v6 }
0x1fdc   :  { %v1975_v13 = vadd.f32 %v1971_v42, %v1955_v9 }
0x1fdd   :  { %3186 = vtanh.f32 %v1974_v45  ;;  %v2090_v53 = vrot.slane %v1974_v45, 7 }
0x1fde   :  { %3188 = vtanh.f32 %v1975_v13  ;;  %v2091_v54 = vrot.slane %v1975_v13, 7 }
0x1fea   :  { %v3187_v14 = vpop.eup %3186 }
0x1feb   :  { %v3189_v16 = vpop.eup %3188  ;;  %1980 = vrot.lane.b32.xlu0 %v3187_v14, %s3433_s12 }
0x1fec   :  { %1982 = vrot.lane.b32.xlu1 %v3189_v16, %s3433_s12 }
0x205d   :  { %v1981_v20 = vpop.permute.xlu0 %1980 }
0x205e   :  { %v1983_v22 = vpop.permute.xlu1 %1982  ;;  %v1986_v24 = vmul.f32 %v3183_v60, %v1981_v20 }
0x205f   :  { %v1987_v26 = vmul.f32 %v3185_v62, %v1983_v22 }
0x2060   :  { %v1990_v27 = vrot.slane %v1986_v24, 3  ;;  %v3940_v28 = vsel %vm1308_vm6, %v3910_v8, %v1986_v24 }
0x2061   :  { %v1991_v29 = vrot.slane %v1987_v26, 2  ;;  %v3944_v30 = vsel %vm1308_vm6, %v3913_v44, %v1987_v26 }
0x2063   :  { %v1992_v33 = vsel %vm327_vm2, %v1991_v29, %v1990_v27 }
0x2064   :  { %1993 = vrot.lane.b32.xlu0 %v1992_v33, %s3434_s3 }
0x20d6   :  { %v1994_v34 = vpop.permute.xlu0 %1993 }
0x20d7   :  { %2947 = vmatmul.mubr.msk.f32.vlgmr.msra.gmra.mxu0 %vm196_vm3, %v1994_v34 }
0x20d8   :  { %2961 = vmatpush3.msra.mxu0 %v3774_v19  ;;  %2968 = vmatprep.mubr.msk.f32.mxu0 %vm3432_vm0, %v3431_v0 }
0x20d9   :  { %2962 = vmatprep.subr.mxu0 %v3431_v0 }
0x20da   :  { %2963 = vmatpush3.msra.mxu0 %v3776_v21 }
0x20db   :  { %2964 = vmatprep.subr.mxu0 %v3431_v0 }
0x20dc   :  { %2965 = vmatpush3.msra.mxu0 %v3780_v23 }
0x20dd   :  { %2966 = vmatprep.subr.mxu0 %v3431_v0 }
0x20de   :  { %2967 = vmatpush3.msra.mxu0 %v3784_v25 }
0x2197   :  { %v2063_v35 = vpop.f32.mrf.mxu0 }
0x2198   :  { %v2068_v36 = vrot.slane %v2063_v35, 4  ;;  %v2069_v2 = vrot.slane %v2063_v35, 5 }
0x2199   :  { %v2948_v37 = vpop.f32.mrf.mxu0 }
0x219a   :  { %v2072_v38 = vadd.f32 %v2068_v36, %v3834_v41  ;;  %v2073_v39 = vadd.f32 %v2069_v2, %v3831_v40 }
0x219c   :  { %3190 = vtanh.f32 %v2072_v38  ;;  %v2687_v8 = vmul.f32 -1.442695, %v2072_v38  ;;  %v2688_v43 = vmul.f32 -1.442695, %v2073_v39 }
0x219d   :  { %3192 = vtanh.f32 %v2073_v39 }
0x219e   :  { %3194 = vpow2.f32 %v2687_v8 }
0x219f   :  { %3196 = vpow2.f32 %v2688_v43 }
0x21a9   :  { %v3191_v4 = vpop.eup %3190 }
0x21aa   :  { %v3193_v7 = vpop.eup %3192  ;;  %2098 = vrot.lane.b32.xlu1 %v3191_v4, %s3433_s12 }
0x21ab   :  { %2100 = vrot.lane.b32.xlu0 %v3193_v7, %s3433_s12  ;;  %v3195_v44 = vpop.eup %3194 }
0x21ac   :  { %v3197_v46 = vpop.eup %3196  ;;  %v2080_v47 = vadd.f32 1.0, %v3195_v44 }
0x21ad   :  { %v2081_v5 = vadd.f32 1.0, %v3197_v46 }
0x21ae   :  { %3198 = vrcp.f32 %v2080_v47 }
0x21af   :  { %3200 = vrcp.f32 %v2081_v5 }
0x21bb   :  { %v3199_v10 = vpop.eup %3198 }
0x21bc   :  { %v3201_v49 = vpop.eup %3200  ;;  %v2094_v55 = vmul.f32 %v3199_v10, %v2090_v53 }
0x21bd   :  { %v2095_v56 = vmul.f32 %v3201_v49, %v2091_v54 }
0x221c   :  { %v2099_v48 = vpop.permute.xlu1 %2098 }
0x221d   :  { %v2101_v50 = vpop.permute.xlu0 %2100  ;;  %v2104_v51 = vmul.f32 %v3199_v10, %v2099_v48 }
0x221e   :  { %v2105_v52 = vmul.f32 %v3201_v49, %v2101_v50 }
0x221f   :  { %2108 = vrot.lane.b32.xlu1 %v2104_v51, %s3434_s3 }
0x2220   :  { %2110 = vrot.lane.b32.xlu0 %v2105_v52, %s3434_s3 }
0x2291   :  { %v2109_v57 = vpop.permute.xlu1 %2108 }
0x2292   :  { %v2111_v58 = vpop.permute.xlu0 %2110  ;;  %v2114_v59 = vadd.f32 %v2109_v57, %v2094_v55 }
0x2293   :  { %v2115_v60 = vadd.f32 %v2111_v58, %v2095_v56 }
0x2294   :  { %3202 = vtanh.f32 %v2114_v59  ;;  %v2230_v2 = vrot.slane %v2114_v59, 7 }
0x2295   :  { %3204 = vtanh.f32 %v2115_v60  ;;  %v2231_v37 = vrot.slane %v2115_v60, 7 }
0x22a1   :  { %v3203_v61 = vpop.eup %3202 }
0x22a2   :  { %v3205_v62 = vpop.eup %3204  ;;  %2120 = vrot.lane.b32.xlu1 %v3203_v61, %s3433_s12 }
0x22a3   :  { %2122 = vrot.lane.b32.xlu0 %v3205_v62, %s3433_s12 }
0x2314   :  { %v2121_v63 = vpop.permute.xlu1 %2120 }
0x2315   :  { %v2123_v1 = vpop.permute.xlu0 %2122  ;;  %v2126_v3 = vmul.f32 %v3199_v10, %v2121_v63 }
0x2316   :  { %v2127_v15 = vmul.f32 %v3201_v49, %v2123_v1 }
0x2317   :  { %v2130_v11 = vrot.slane %v2126_v3, 4  ;;  %v3968_v6 = vsel %vm1311_vm7, %v3940_v28, %v2126_v3 }
0x2318   :  { %v2131_v9 = vrot.slane %v2127_v15, 3  ;;  %v3972_v12 = vsel %vm1311_vm7, %v3944_v30, %v2127_v15 }
0x231a   :  { %v2132_v42 = vsel %vm327_vm2, %v2131_v9, %v2130_v11 }
0x231b   :  { %2133 = vrot.lane.b32.xlu1 %v2132_v42, %s3434_s3 }
0x238d   :  { %v2134_v45 = vpop.permute.xlu1 %2133 }
0x238e   :  { %2958 = vmatmul.mubr.msk.f32.vlgmr.msra.gmra.mxu1 %vm196_vm3, %v2134_v45 }
0x238f   :  { %2972 = vmatpush3.msra.mxu1 %v3774_v19  ;;  %2979 = vmatprep.mubr.msk.f32.mxu1 %vm3432_vm0, %v3431_v0 }
0x2390   :  { %2973 = vmatprep.subr.mxu1 %v3431_v0 }
0x2391   :  { %2974 = vmatpush3.msra.mxu1 %v3776_v21 }
0x2392   :  { %2975 = vmatprep.subr.mxu1 %v3431_v0 }
0x2393   :  { %2976 = vmatpush3.msra.mxu1 %v3780_v23 }
0x2394   :  { %2977 = vmatprep.subr.mxu1 %v3431_v0 }
0x2395   :  { %2978 = vmatpush3.msra.mxu1 %v3784_v25 }
0x244e   :  { %v2203_v13 = vpop.f32.mrf.mxu1 }
0x244f   :  { %v2208_v14 = vrot.slane %v2203_v13, 3  ;;  %v2209_v16 = vrot.slane %v2203_v13, 4 }
0x2450   :  { %v2959_v20 = vpop.f32.mrf.mxu1 }
0x2451   :  { %v2212_v19 = vadd.f32 %v2208_v14, %v3834_v41  ;;  %v2213_v22 = vadd.f32 %v2209_v16, %v3831_v40 }
0x2453   :  { %3206 = vtanh.f32 %v2212_v19  ;;  %v2690_v23 = vmul.f32 -1.442695, %v2212_v19  ;;  %v2691_v0 = vmul.f32 -1.442695, %v2213_v22 }
0x2454   :  { %3208 = vtanh.f32 %v2213_v22 }
0x2455   :  { %3210 = vpow2.f32 %v2690_v23 }
0x2456   :  { %3212 = vpow2.f32 %v2691_v0 }
0x2460   :  { %v3207_v24 = vpop.eup %3206 }
0x2461   :  { %v3209_v21 = vpop.eup %3208  ;;  %2238 = vrot.lane.b32.xlu0 %v3207_v24, %s3433_s12 }
0x2462   :  { %2240 = vrot.lane.b32.xlu1 %v3209_v21, %s3433_s12  ;;  %v3211_v25 = vpop.eup %3210 }
0x2463   :  { %v3213_v26 = vpop.eup %3212  ;;  %v2220_v27 = vadd.f32 1.0, %v3211_v25 }
0x2464   :  { %v2221_v28 = vadd.f32 1.0, %v3213_v26 }
0x2465   :  { %3214 = vrcp.f32 %v2220_v27 }
0x2466   :  { %3216 = vrcp.f32 %v2221_v28 }
0x2472   :  { %v3215_v29 = vpop.eup %3214 }
0x2473   :  { %v3217_v33 = vpop.eup %3216  ;;  %v2234_v38 = vmul.f32 %v3215_v29, %v2230_v2 }
0x2474   :  { %v2235_v39 = vmul.f32 %v3217_v33, %v2231_v37 }
0x24d3   :  { %v2239_v30 = vpop.permute.xlu0 %2238 }
0x24d4   :  { %v2241_v34 = vpop.permute.xlu1 %2240  ;;  %v2244_v35 = vmul.f32 %v3215_v29, %v2239_v30 }
0x24d5   :  { %v2245_v36 = vmul.f32 %v3217_v33, %v2241_v34 }
0x24d6   :  { %2248 = vrot.lane.b32.xlu0 %v2244_v35, %s3434_s3 }
0x24d7   :  { %2250 = vrot.lane.b32.xlu1 %v2245_v36, %s3434_s3 }
0x2548   :  { %v2249_v4 = vpop.permute.xlu0 %2248 }
0x2549   :  { %v2251_v7 = vpop.permute.xlu1 %2250  ;;  %v2254_v8 = vadd.f32 %v2249_v4, %v2234_v38 }
0x254a   :  { %v2255_v43 = vadd.f32 %v2251_v7, %v2235_v39 }
0x254b   :  { %3218 = vtanh.f32 %v2254_v8  ;;  %v2370_v16 = vrot.slane %v2254_v8, 7 }
0x254c   :  { %3220 = vtanh.f32 %v2255_v43  ;;  %v2371_v20 = vrot.slane %v2255_v43, 7 }
0x2558   :  { %v3219_v44 = vpop.eup %3218 }
0x2559   :  { %v3221_v46 = vpop.eup %3220  ;;  %2260 = vrot.lane.b32.xlu0 %v3219_v44, %s3433_s12 }
0x255a   :  { %2262 = vrot.lane.b32.xlu1 %v3221_v46, %s3433_s12 }
0x25cb   :  { %v2261_v47 = vpop.permute.xlu0 %2260 }
0x25cc   :  { %v2263_v5 = vpop.permute.xlu1 %2262  ;;  %v2266_v10 = vmul.f32 %v3215_v29, %v2261_v47 }
0x25cd   :  { %v2267_v48 = vmul.f32 %v3217_v33, %v2263_v5 }
0x25ce   :  { %v2270_v49 = vrot.slane %v2266_v10, 5  ;;  %v2556_v50 = vsel %vm1314_vm8, %v3968_v6, %v2266_v10 }
0x25cf   :  { %v2271_v51 = vrot.slane %v2267_v48, 4  ;;  %v2557_v52 = vsel %vm1314_vm8, %v3972_v12, %v2267_v48 }
0x25d1   :  { %v2272_v53 = vsel %vm327_vm2, %v2271_v51, %v2270_v49 }
0x25d2   :  { %2273 = vrot.lane.b32.xlu0 %v2272_v53, %s3434_s3 }
0x2644   :  { %v2274_v54 = vpop.permute.xlu0 %2273 }
0x2645   :  { %2969 = vmatmul.mubr.msk.f32.vlgmr.msra.gmra.mxu0 %vm196_vm3, %v2274_v54 }
0x2705   :  { %v2343_v55 = vpop.f32.mrf.mxu0 }
0x2706   :  { %v2348_v56 = vrot.slane %v2343_v55, 2  ;;  %v2349_v57 = vrot.slane %v2343_v55, 3 }
0x2707   :  { %v2970_v58 = vpop.f32.mrf.mxu0 }
0x2708   :  { %v2352_v59 = vadd.f32 %v2348_v56, %v3834_v41  ;;  %v2353_v60 = vadd.f32 %v2349_v57, %v3831_v40 }
0x270a   :  { %3222 = vtanh.f32 %v2352_v59  ;;  %v2693_v63 = vmul.f32 -1.442695, %v2352_v59  ;;  %v2694_v1 = vmul.f32 -1.442695, %v2353_v60 }
0x270b   :  { %3224 = vtanh.f32 %v2353_v60 }
0x270c   :  { %3226 = vpow2.f32 %v2693_v63 }
0x270d   :  { %3228 = vpow2.f32 %v2694_v1 }
0x2717   :  { %v3223_v61 = vpop.eup %3222 }
0x2718   :  { %v3225_v62 = vpop.eup %3224  ;;  %2378 = vrot.lane.b32.xlu1 %v3223_v61, %s3433_s12 }
0x2719   :  { %2380 = vrot.lane.b32.xlu0 %v3225_v62, %s3433_s12  ;;  %v3227_v3 = vpop.eup %3226 }
0x271a   :  { %v3229_v15 = vpop.eup %3228  ;;  %v2360_v11 = vadd.f32 1.0, %v3227_v3  ;;  %v1325_v3 = vrot.slane %v3806_v32, 7 }
0x271b   :  { %v2361_v6 = vadd.f32 1.0, %v3229_v15  ;;  %v1338_v15 = vrot.slane %v3770_v18, 7 }
0x271c   :  { %3230 = vrcp.f32 %v2360_v11 }
0x271d   :  { %3232 = vrcp.f32 %v2361_v6 }
0x2729   :  { %v3231_v9 = vpop.eup %3230 }
0x272a   :  { %v3233_v42 = vpop.eup %3232  ;;  %v2374_v19 = vmul.f32 %v3231_v9, %v2370_v16 }
0x272b   :  { %v2375_v22 = vmul.f32 %v3233_v42, %v2371_v20 }
0x278a   :  { %v2379_v12 = vpop.permute.xlu1 %2378 }
0x278b   :  { %v2381_v45 = vpop.permute.xlu0 %2380  ;;  %v2384_v13 = vmul.f32 %v3231_v9, %v2379_v12 }
0x278c   :  { %v2385_v14 = vmul.f32 %v3233_v42, %v2381_v45 }
0x278d   :  { %2388 = vrot.lane.b32.xlu1 %v2384_v13, %s3434_s3 }
0x278e   :  { %2390 = vrot.lane.b32.xlu0 %v2385_v14, %s3434_s3 }
0x27ff   :  { %v2389_v24 = vpop.permute.xlu1 %2388 }
0x2800   :  { %v2391_v21 = vpop.permute.xlu0 %2390  ;;  %v2394_v23 = vadd.f32 %v2389_v24, %v2374_v19 }
0x2801   :  { %v2395_v0 = vadd.f32 %v2391_v21, %v2375_v22 }
0x2802   :  { %3234 = vtanh.f32 %v2394_v23  ;;  %v2510_v55 = vrot.slane %v2394_v23, 7 }
0x2803   :  { %3236 = vtanh.f32 %v2395_v0  ;;  %v2511_v56 = vrot.slane %v2395_v0, 7 }
0x280f   :  { %v3235_v25 = vpop.eup %3234 }
0x2810   :  { %v3237_v26 = vpop.eup %3236  ;;  %2400 = vrot.lane.b32.xlu1 %v3235_v25, %s3433_s12 }
0x2811   :  { %2402 = vrot.lane.b32.xlu0 %v3237_v26, %s3433_s12 }
0x2882   :  { %v2401_v27 = vpop.permute.xlu1 %2400 }
0x2883   :  { %v2403_v28 = vpop.permute.xlu0 %2402  ;;  %v2406_v29 = vmul.f32 %v3231_v9, %v2401_v27 }
0x2884   :  { %v2407_v30 = vmul.f32 %v3233_v42, %v2403_v28 }
0x2885   :  { %v2410_v33 = vrot.slane %v2406_v29, 6  ;;  %v4010_v34 = vsel %vm1317_vm9, %v2556_v50, %v2406_v29 }
0x2886   :  { %v2411_v35 = vrot.slane %v2407_v30, 5  ;;  %v4013_v36 = vsel %vm1317_vm9, %v2557_v52, %v2407_v30 }
0x2888   :  { %v2412_v2 = vsel %vm327_vm2, %v2411_v35, %v2410_v33 }
0x2889   :  { %2413 = vrot.lane.b32.xlu1 %v2412_v2, %s3434_s3 }
0x28fb   :  { %v2414_v37 = vpop.permute.xlu1 %2413 }
0x28fc   :  { %2980 = vmatmul.mubr.msk.f32.vlgmr.msra.gmra.mxu1 %vm196_vm3, %v2414_v37 }
0x29bc   :  { %v2483_v38 = vpop.f32.mrf.mxu1 }
0x29bd   :  { %v2488_v39 = vrot.slane %v2483_v38, 1  ;;  %v2489_v4 = vrot.slane %v2483_v38, 2 }
0x29be   :  { %v2981_v7 = vpop.f32.mrf.mxu1 }
0x29bf   :  { %v2492_v8 = vadd.f32 %v2488_v39, %v3834_v41  ;;  %v2493_v43 = vadd.f32 %v2489_v4, %v3831_v40 }
0x29c1   :  { %3238 = vtanh.f32 %v2492_v8  ;;  %v2696_v47 = vmul.f32 -1.442695, %v2492_v8  ;;  %v2697_v5 = vmul.f32 -1.442695, %v2493_v43 }
0x29c2   :  { %3240 = vtanh.f32 %v2493_v43 }
0x29c3   :  { %3242 = vpow2.f32 %v2696_v47 }
0x29c4   :  { %3244 = vpow2.f32 %v2697_v5 }
0x29ce   :  { %v3239_v44 = vpop.eup %3238 }
0x29cf   :  { %v3241_v46 = vpop.eup %3240  ;;  %2518 = vrot.lane.b32.xlu1 %v3239_v44, %s3433_s12 }
0x29d0   :  { %2520 = vrot.lane.b32.xlu0 %v3241_v46, %s3433_s12  ;;  %v3243_v10 = vpop.eup %3242 }
0x29d1   :  { %v3245_v48 = vpop.eup %3244  ;;  %v2500_v49 = vadd.f32 1.0, %v3243_v10 }
0x29d2   :  { %v2501_v50 = vadd.f32 1.0, %v3245_v48 }
0x29d3   :  { %3246 = vrcp.f32 %v2500_v49 }
0x29d4   :  { %3248 = vrcp.f32 %v2501_v50 }
0x29e0   :  { %v3247_v41 = vpop.eup %3246 }
0x29e1   :  { %v3249_v51 = vpop.eup %3248  ;;  %v2514_v57 = vmul.f32 %v3247_v41, %v2510_v55 }
0x29e2   :  { %v2515_v58 = vmul.f32 %v3249_v51, %v2511_v56 }
0x2a41   :  { %v2519_v40 = vpop.permute.xlu1 %2518 }
0x2a42   :  { %v2521_v52 = vpop.permute.xlu0 %2520  ;;  %v2524_v53 = vmul.f32 %v3247_v41, %v2519_v40 }
0x2a43   :  { %v2525_v54 = vmul.f32 %v3249_v51, %v2521_v52 }
0x2a44   :  { %2528 = vrot.lane.b32.xlu1 %v2524_v53, %s3434_s3 }
0x2a45   :  { %2530 = vrot.lane.b32.xlu0 %v2525_v54, %s3434_s3 }
0x2ab6   :  { %v2529_v59 = vpop.permute.xlu1 %2528 }
0x2ab7   :  { %v2531_v60 = vpop.permute.xlu0 %2530  ;;  %v2534_v61 = vadd.f32 %v2529_v59, %v2514_v57 }
0x2ab8   :  { %v2535_v62 = vadd.f32 %v2531_v60, %v2515_v58 }
0x2ab9   :  { %3250 = vtanh.f32 %v2534_v61 }
0x2aba   :  { %3252 = vtanh.f32 %v2535_v62  ;;  %v2576_v11 = vrot.slane %v2535_v62, 7 }
0x2ac6   :  { %v3251_v63 = vpop.eup %3250 }
0x2ac7   :  { %v3253_v1 = vpop.eup %3252  ;;  %2540 = vrot.lane.b32.xlu1 %v3251_v63, %s3433_s12 }
0x2ac8   :  { %2542 = vrot.lane.b32.xlu0 %v3253_v1, %s3433_s12 }
0x2acb   :  { %1328 = vrot.lane.b32.xlu1 %v1325_v3, %s3434_s3 }
0x2acc   :  { %1326 = vrot.lane.b32.xlu0 %v3804_v31, %s3434_s3 }
0x2acf   :  { %1341 = vrot.lane.b32.xlu1 %v1338_v15, %s3435_s6 }
0x2ad0   :  { %1339 = vrot.lane.b32.xlu0 %v3768_v17, %s3435_s6 }
0x2ad3   :  { %2579 = vrot.lane.b32.xlu1 %v2576_v11, %s3435_s6 }
0x2ad4   :  { %2577 = vrot.lane.b32.xlu0 %v2534_v61, %s3435_s6 }
0x2b39   :  { %v2541_v6 = vpop.permute.xlu1 %2540 }
0x2b3a   :  { %v2543_v9 = vpop.permute.xlu0 %2542  ;;  %v2546_v12 = vmul.f32 %v3247_v41, %v2541_v6 }
0x2b3b   :  { %v2547_v42 = vmul.f32 %v3249_v51, %v2543_v9 }
0x2b3c   :  { %2565 = vrot.lane.b32.xlu0 %v2546_v12, %s3434_s3  ;;  %v2560_v17 = vsel %vm1320_vm10, %v4010_v34, %v2546_v12 }
0x2b3d   :  { %v2564_v32 = vrot.slane %v2547_v42, 7  ;;  %v1329_v45 = vpop.permute.xlu1 %1328  ;;  %v2561_v14 = vsel %vm1320_vm10, %v4013_v36, %v2547_v42 }
0x2b3e   :  { %v1327_v31 = vpop.permute.xlu0 %1326  ;;  %1335 = vst.msk [vmem:[#allocation12 + $0x1] sm:$0x1] %vm1334_vm11, %v1329_v45 }
0x2b3f   :  { %1333 = vst.msk [vmem:[#allocation12 - $0x7] sm:$0x80] %vm1332_vm12, %v1327_v31  ;;  %2567 = vrot.lane.b32.xlu1 %v2564_v32, %s3434_s3 }
0x2b40   :  { %2588 = vrot.lane.b32.xlu0 %v2560_v17, %s3434_s3 }
0x2b41   :  { %v1342_v18 = vpop.permute.xlu1 %1341 }
0x2b42   :  { %v1340_v13 = vpop.permute.xlu0 %1339  ;;  %1346 = vst.msk [vmem:[#allocation14 + $0x1] sm:$0x1] %vm1334_vm11, %v1342_v18 }
0x2b43   :  { %1345 = vst.msk [vmem:[#allocation14 - $0x7] sm:$0x80] %vm1332_vm12, %v1340_v13  ;;  %2590 = vrot.lane.b32.xlu1 %v2561_v14, %s3434_s3 }
0x2b45   :  { %v2580_v16 = vpop.permute.xlu1 %2579 }
0x2b46   :  { %v2578_v20 = vpop.permute.xlu0 %2577  ;;  %2585 = vst.msk [vmem:[#allocation14 + $0x3] sm:$0x1] %vm1334_vm11, %v2580_v16 }
0x2b47   :  { %2584 = vst.msk [vmem:[#allocation14 - $0x5] sm:$0x80] %vm1332_vm12, %v2578_v20 }
0x2bae   :  { %v2566_v19 = vpop.permute.xlu0 %2565 }
0x2baf   :  { %2572 = vst.msk [vmem:[#allocation12 - $0x5] sm:$0x80] %vm1332_vm12, %v2566_v19 }
0x2bb1   :  { %v2568_v22 = vpop.permute.xlu1 %2567 }
0x2bb2   :  { %2573 = vst.msk [vmem:[#allocation12 + $0x3] sm:$0x1] %vm1334_vm11, %v2568_v22  ;;  %v2589_v24 = vpop.permute.xlu0 %2588 }
0x2bb3   :  { %2594 = vst.msk [vmem:[#allocation11] sm:$0xff] %vm196_vm3, %v2589_v24 }
0x2bb4   :  { %3365 = shalt.err (!%p3362_p1)
}
0x2bb5   :  { %s3439_s24 = smov 2   ;;  %s3374_s26 = scalar_lea.vmem %s2626_s20, 64 }
0x2bb6   :  { %2619 = dma.vmem_to_hbm [thread:$0]  %s2614_s18, 64, %s4081_s8, [#allocation13], %s3434_s3, %s3434_s3, %s3439_s24  }
0x2bb7   :  { %p3375_p2 = scmp.ne.s32.totalorder %s2626_s20, %s3374_s26  ;;  %p3379_p3 = scmp.lt.s32.totalorder %s2626_s20, %s2626_s20 }
0x2bb8   :  { %p3380_p4 = scmp.lt.s32.totalorder %s3374_s26, %s3374_s26 }
0x2bba   :  { %p3381_p5 = por %p3380_p4, %p3379_p3 }
0x2bbc   :  { %p3382_p6 = pnand %p3381_p5, %p3375_p2 }
0x2bbe   :  { %3385 = shalt.err (!%p3382_p6)
}
0x2bbf   :  { %2631 = dma.vmem_to_hbm [thread:$0]  %s2626_s20, 64, %s4082_s9, [#allocation13], %s3434_s3, %s3434_s3, %s3439_s24   ;;  %v2591_v21 = vpop.permute.xlu1 %2590 }
0x2bc0   :  { %2595 = vst.msk [vmem:[#allocation11 + $0x8] sm:$0xff] %vm196_vm3, %v2591_v21  ;;  %s3394_s8 = scalar_lea.vmem %s4048_s22, 256  ;;  %p3399_p8 = scmp.lt.s32.totalorder %s4048_s22, %s4048_s22 }
0x2bc1   :  { %p3395_p7 = scmp.ne.s32.totalorder %s4048_s22, %s3394_s8  ;;  %p3400_p9 = scmp.lt.s32.totalorder %s3394_s8, %s3394_s8 }
0x2bc3   :  { %p3401_p10 = por %p3400_p9, %p3399_p8 }
0x2bc5   :  { %p3402_p11 = pnand %p3401_p10, %p3395_p7 }
0x2bc7   :  { %3405 = shalt.err (!%p3402_p11)
}
0x2bc8   :  { %2607 = dma.vmem_to_hbm [thread:$0]  %s4048_s22, 256, %s4080_s7, [#allocation4], %s3426_s14, %s3426_s14, %s3427_s15  }
0x2bc9   :  { %3420 = dma.done.wait [#allocation4], 256  }
0x2bca   :  { %3421 = vsyncadd [#allocation4], 4294967040 }
0x2bcb   :  { %3422 = dma.done.wait [#allocation13], 128  }
0x2bcc   :  { %3423 = vsyncadd [#allocation13], 4294967168 }
0x2bcd   :  { %2641 = vsyncpa [#allocation3], 1 }
0x2bce   :  { %2642 = vsyncpa [#allocation6], 1 }
0x2bcf   :  { %2643 = vsyncpa [#allocation9], 1 }
0x2bd0   :  { %2644 = vsyncpa [#allocation4], 1 }
0x2bd1   :  { %2645 = vsyncpa [#allocation13], 1 }

</bundles_post_ra>
